<compile_context>
chip_gen: v7x
topology: tpu7x:2x2x1
jax: 0.10.0
libtpu: 0.0.40
codegen_flags: <defaults>
</compile_context>

<pallas_src>
import functools
import numpy as np
import jax
import jax.numpy as jnp
from jax.experimental import pallas as pl
from jax.experimental.pallas import tpu as pltpu

_EPS = 1e-5  # nn.LayerNorm default


def _rotate_matrix(dim_head: int) -> jnp.ndarray:
    """Matrix R such that x @ R == rotate_every_two(x) (interleaved (-x2, x1))."""
    r = np.zeros((dim_head, dim_head), dtype=np.float32)
    for i in range(dim_head // 2):
        r[2 * i + 1, 2 * i] = -1.0   # out[2i]   = -x[2i+1]
        r[2 * i, 2 * i + 1] = 1.0    # out[2i+1] =  x[2i]
    return jnp.asarray(r)


def _vit_kernel(src_ref, sin_ref, cos_ref,
                ln1g_ref, ln1b_ref, wqkv_ref, wo_ref, bo_ref,
                ln2g_ref, ln2b_ref, w1_ref, b1_ref, w2_ref, b2_ref,
                out_ref, attn_ref, x_scr,
                *, heads: int, dim_head: int, mlp_dim: int,
                batch_tile: int, seq_len: int):
    """One (batch-block, layer) grid step. Residual stream carried in x_scr."""
    layer = pl.program_id(1)
    n_layers = pl.num_programs(1)
    bt, N, d = batch_tile, seq_len, dim_head
    M = bt * N
    fused = 5 * dim_head
    bf16 = jnp.bfloat16

    # Load residual stream into VMEM scratch on the first layer of this block.
    @pl.when(layer == 0)
    def _():
        x_scr[...] = src_ref[...]

    x = x_scr[...]                                   # [M, D] f32

    # ---- PreNorm (LayerNorm 1), one-pass: var = E[x^2] - mean^2 ----
    mu = jnp.mean(x, axis=-1, keepdims=True)
    ms = jnp.mean(x * x, axis=-1, keepdims=True)
    xn = (x - mu) * jax.lax.rsqrt(ms - mu * mu + _EPS)
    xn = xn * ln1g_ref[0] + ln1b_ref[0]

    # ---- Fused QKV (+ pre-rotated q/k) projection: one wide bf16 matmul ----
    # Columns are head-contiguous: [h0: q k v qR kR | h1: ...]; the attention
    # scale is already folded into the q columns.
    qkv = jnp.dot(xn.astype(bf16), wqkv_ref[0],
                  preferred_element_type=jnp.float32)        # [M, heads*5*dh] f32

    # Single head-major relayout (stack of H lane slices), then cheap sub-slices.
    qkv_h = jnp.stack([qkv[:, h * fused:(h + 1) * fused] for h in range(heads)],
                      axis=0)                                # [H, M, 5*dh]
    sin = sin_ref[...][None]                                 # [1, M, dh]
    cos = cos_ref[...][None]

    # Rotary is pure VPU (rotation matrix folded into weights); cast straight to bf16.
    q = (qkv_h[:, :, 0 * d:1 * d] * cos + qkv_h[:, :, 3 * d:4 * d] * sin).astype(bf16)
    k = (qkv_h[:, :, 1 * d:2 * d] * cos + qkv_h[:, :, 4 * d:5 * d] * sin).astype(bf16)
    v = qkv_h[:, :, 2 * d:3 * d].astype(bf16)

    # [H, bt*N, dh] -> [H*bt, N, dh]: pure row regrouping (no lane movement).
    qh = q.reshape(heads * bt, N, d)
    kh = k.reshape(heads * bt, N, d)
    vh = v.reshape(heads * bt, N, d)

    # ---- Attention: all (head, batch) pairs batched into single contractions ----
    # TODO(synk): replace the dense [H*bt, N, N] softmax with a KV-tiled
    # online-softmax loop for long sequences (dense kept: the module returns the
    # full attention matrix and the demo N is tiny).
    dots = jnp.einsum("hnd,hmd->hnm", qh, kh,
                      preferred_element_type=jnp.float32)    # scale folded into W_q
    mx = jnp.max(dots, axis=-1, keepdims=True)
    e = jnp.exp(dots - mx)
    attn = e / jnp.sum(e, axis=-1, keepdims=True)            # exact: scores returned
    oh = jnp.einsum("hnm,hmd->hnd", attn.astype(bf16), vh,
                    preferred_element_type=jnp.float32)      # [H*bt, N, dh]

    # Merge heads back onto lanes -> ONE [M, inner] @ [inner, D] output projection.
    oh = oh.astype(bf16).reshape(heads, M, d)
    o_cat = jnp.concatenate([oh[h] for h in range(heads)], axis=-1)    # [M, inner]
    o_proj = jnp.dot(o_cat, wo_ref[0],
                     preferred_element_type=jnp.float32) + bo_ref[0]
    src1 = o_proj + x                    # residual 1

    # ---- PreNorm (LayerNorm 2) + GEGLU FeedForward ----
    mu2 = jnp.mean(src1, axis=-1, keepdims=True)
    ms2 = jnp.mean(src1 * src1, axis=-1, keepdims=True)
    x2 = (src1 - mu2) * jax.lax.rsqrt(ms2 - mu2 * mu2 + _EPS)
    x2 = x2 * ln2g_ref[0] + ln2b_ref[0]

    h12 = jnp.dot(x2.astype(bf16), w1_ref[0],
                  preferred_element_type=jnp.float32) + b1_ref[0]      # [M, 2*mlp]
    # TODO(synk): PyTorch F.gelu defaults to the exact erf GELU; tanh approximation used.
    ge = h12[:, :mlp_dim] * jax.nn.gelu(h12[:, mlp_dim:], approximate=True)
    y = jnp.dot(ge.astype(bf16), w2_ref[0],
                preferred_element_type=jnp.float32) + b2_ref[0]

    new_x = y + src1                     # residual 2
    x_scr[...] = new_x

    # Only the final layer's outputs ever leave VMEM.
    @pl.when(layer == n_layers - 1)
    def _():
        out_ref[...] = new_x
        attn_ref[0] = attn


def vision_transformer_forward(src, src_pos_emb, params, *, heads, dim_head,
                               mlp_dim, batch_tile=None):
    """Pallas equivalent of VisionTransformer.forward (use_rotary=True, use_glu=True)."""
    sin, cos = src_pos_emb               # each [B, N, dim_head]
    B, N, D = src.shape
    inner = heads * dim_head
    depth = len(params)
    bf16 = jnp.bfloat16

    # Batch tile: amortize per-layer weight DMA and fill MXU rows.
    if batch_tile is None:
        batch_tile = 1
        for cand in range(1, B + 1):
            if B % cand == 0 and cand * N <= 1024:
                batch_tile = cand
    assert B % batch_tile == 0
    if batch_tile != B:
        assert (batch_tile * N) % 8 == 0, "batch_tile*N must be a multiple of 8"
    n_bblk = B // batch_tile

    # Flatten activations wrapper-side: each grid step sees a [batch_tile*N, *] slab.
    src2d = src.reshape(B * N, D).astype(jnp.float32)
    sin2d = sin.reshape(B * N, dim_head).astype(jnp.float32)   # per-head, NOT tiled
    cos2d = cos.reshape(B * N, dim_head).astype(jnp.float32)

    # ---- one-time weight preprocessing (XLA side) ----
    scale = dim_head ** -0.5
    rot_full = jnp.kron(jnp.eye(heads, dtype=jnp.float32), _rotate_matrix(dim_head))

    def stk(name):
        return jnp.stack([p[name] for p in params], axis=0)

    w_qkv = stk("w_qkv")                                  # [L, D, 3*inner]
    w_q = w_qkv[:, :, :inner] * scale                     # fold 1/sqrt(dh) into q
    w_k = w_qkv[:, :, inner:2 * inner]
    w_v = w_qkv[:, :, 2 * inner:]
    w_qr = w_q @ rot_full                                 # rotate_every_two folded
    w_kr = w_k @ rot_full
    blocks = []                                           # head-contiguous columns
    for h in range(heads):
        sl = slice(h * dim_head, (h + 1) * dim_head)
        blocks += [w_q[:, :, sl], w_k[:, :, sl], w_v[:, :, sl],
                   w_qr[:, :, sl], w_kr[:, :, sl]]
    w_big = jnp.concatenate(blocks, axis=-1).astype(bf16)     # [L, D, 5*inner]

    ln1_g = stk("ln1_g")[:, None, :]                      # [L, 1, D] f32
    ln1_b = stk("ln1_b")[:, None, :]
    w_o = stk("w_o").astype(bf16)                         # [L, inner, D]
    b_o = stk("b_o")[:, None, :]
    ln2_g = stk("ln2_g")[:, None, :]
    ln2_b = stk("ln2_b")[:, None, :]
    w1 = stk("w1").astype(bf16)                           # [L, D, 2*mlp]
    b1 = stk("b1")[:, None, :]
    w2 = stk("w2").astype(bf16)                           # [L, mlp, D]
    b2 = stk("b2")[:, None, :]

    kernel = functools.partial(_vit_kernel, heads=heads, dim_head=dim_head,
                               mlp_dim=mlp_dim, batch_tile=batch_tile, seq_len=N)

    def wspec(shape):                                     # per-layer weight block
        nd = len(shape)
        return pl.BlockSpec(shape, lambda b, l, _n=nd: (l,) + (0,) * (_n - 1))

    def aspec(shape):                                     # per-batch-block activation
        nd = len(shape)
        return pl.BlockSpec(shape, lambda b, l, _n=nd: (b,) + (0,) * (_n - 1))

    # Per-generation VMEM budget: ~56 MiB on v7x (64 MiB physical), ~100 MiB on
    # v5e/v6e (128 MiB physical); always leave compiler headroom.
    try:
        cap = int(getattr(pltpu.get_tpu_info(), "vmem_capacity_bytes",
                          64 * 1024 * 1024))
    except Exception:
        cap = 64 * 1024 * 1024
    vmem_limit = int(max(32 * 1024 * 1024,
                         min(cap - 8 * 1024 * 1024, 100 * 1024 * 1024)))

    out2d, attn4d = pl.pallas_call(
        kernel,
        out_shape=(jax.ShapeDtypeStruct((B * N, D), jnp.float32),
                   jax.ShapeDtypeStruct((n_bblk, heads * batch_tile, N, N),
                                        jnp.float32)),
        grid=(n_bblk, depth),
        in_specs=[
            aspec((batch_tile * N, D)),                    # src (flattened)
            aspec((batch_tile * N, dim_head)),             # sin
            aspec((batch_tile * N, dim_head)),             # cos
            wspec((1, 1, D)), wspec((1, 1, D)),            # ln1 gamma / beta
            wspec((1, D, 5 * inner)),                      # fused [q|k|v|qR|kR] weights
            wspec((1, inner, D)), wspec((1, 1, D)),        # W_out, b_out
            wspec((1, 1, D)), wspec((1, 1, D)),            # ln2 gamma / beta
            wspec((1, D, 2 * mlp_dim)), wspec((1, 1, 2 * mlp_dim)),  # FF W1, b1
            wspec((1, mlp_dim, D)), wspec((1, 1, D)),      # FF W2, b2
        ],
        out_specs=(aspec((batch_tile * N, D)),
                   pl.BlockSpec((1, heads * batch_tile, N, N),
                                lambda b, l: (b, 0, 0, 0))),
        scratch_shapes=[pltpu.VMEM((batch_tile * N, D), jnp.float32)],
        compiler_params=pltpu.CompilerParams(
            dimension_semantics=("parallel", "arbitrary"),
            vmem_limit_bytes=vmem_limit),
    )(src2d, sin2d, cos2d,
      ln1_g, ln1_b, w_big, w_o, b_o,
      ln2_g, ln2_b, w1, b1, w2, b2)

    out = out2d.reshape(B, N, D)
    # kernel rows are ordered (head, local_batch); restore [B, heads, N, N].
    attn = attn4d.reshape(n_bblk, heads, batch_tile, N, N)
    attn = jnp.transpose(attn, (0, 2, 1, 3, 4)).reshape(B, heads, N, N)
    # The torch module overwrites the dict each layer; final value == last layer.
    return out, {"self_attention": attn}


# ----------------------- parameter construction (synthetic) -----------------------
def init_params(key, depth, dim, heads, dim_head, mlp_dim):
    inner = heads * dim_head
    params = []
    for layer in range(depth):
        ks = jax.random.split(jax.random.fold_in(key, layer), 8)
        params.append(dict(
            ln1_g=1.0 + 0.02 * jax.random.normal(ks[0], (dim,), jnp.float32),
            ln1_b=0.02 * jax.random.normal(ks[1], (dim,), jnp.float32),
            w_qkv=0.05 * jax.random.normal(ks[2], (dim, 3 * inner), jnp.float32),
            w_o=0.05 * jax.random.normal(ks[3], (inner, dim), jnp.float32),
            b_o=0.02 * jax.random.normal(ks[4], (dim,), jnp.float32),
            ln2_g=1.0 + 0.02 * jax.random.normal(ks[5], (dim,), jnp.float32),
            ln2_b=0.02 * jax.random.normal(ks[6], (dim,), jnp.float32),
            w1=0.05 * jax.random.normal(ks[7], (dim, 2 * mlp_dim), jnp.float32),
            b1=jnp.zeros((2 * mlp_dim,), jnp.float32),
            w2=0.05 * jax.random.normal(jax.random.fold_in(ks[7], 1),
                                        (mlp_dim, dim), jnp.float32),
            b2=jnp.zeros((dim,), jnp.float32),
        ))
    return params


# ----------------------- pure-JAX f32 reference for verification -----------------------
def _layer_ref(src, sin, cos, p, heads, dim_head, mlp_dim):
    inner = heads * dim_head
    B, N, D = src.shape

    def ln(x, g, b):
        mu = x.mean(-1, keepdims=True)
        var = ((x - mu) ** 2).mean(-1, keepdims=True)
        return (x - mu) / jnp.sqrt(var + _EPS) * g + b

    def rot2(t):
        shp = t.shape
        t = t.reshape(shp[:-1] + (shp[-1] // 2, 2))
        return jnp.stack([-t[..., 1], t[..., 0]], axis=-1).reshape(shp)

    xn = ln(src, p["ln1_g"], p["ln1_b"])
    qkv = xn @ p["w_qkv"]
    q, k, v = (qkv[..., :inner], qkv[..., inner:2 * inner], qkv[..., 2 * inner:])
    q = q.reshape(B, N, heads, dim_head).transpose(0, 2, 1, 3)
    k = k.reshape(B, N, heads, dim_head).transpose(0, 2, 1, 3)
    v = v.reshape(B, N, heads, dim_head).transpose(0, 2, 1, 3)
    sinb, cosb = sin[:, None], cos[:, None]
    q = q * cosb + rot2(q) * sinb
    k = k * cosb + rot2(k) * sinb
    dots = jnp.einsum("bhid,bhjd->bhij", q, k) * dim_head ** -0.5
    attn = jax.nn.softmax(dots, axis=-1)
    o = jnp.einsum("bhij,bhjd->bhid", attn, v)
    o = o.transpose(0, 2, 1, 3).reshape(B, N, inner) @ p["w_o"] + p["b_o"]
    src1 = o + src
    x2 = ln(src1, p["ln2_g"], p["ln2_b"])
    h12 = x2 @ p["w1"] + p["b1"]
    y = (h12[..., :mlp_dim] * jax.nn.gelu(h12[..., mlp_dim:], approximate=True)) @ p["w2"] + p["b2"]
    return y + src1, attn


if __name__ == "__main__":
    # Small, module-consistent config: dim=32, depth=2, heads=4, dim_head=8, mlp_dim=64.
    # (image_size is stored by the torch module but unused in forward.)
    B, N = 2, 16
    dim, depth, heads, dim_head, mlp_dim = 32, 2, 4, 8, 64

    key = jax.random.PRNGKey(0)
    k_src, k_pos, k_par = jax.random.split(key, 3)

    src = jax.random.normal(k_src, (B, N, dim), dtype=jnp.float32)
    theta = jax.random.uniform(k_pos, (B, N, dim_head), dtype=jnp.float32,
                               minval=0.0, maxval=2.0 * np.pi)
    pos_emb = (jnp.sin(theta), jnp.cos(theta))     # (sin, cos) rotary pair

    params = init_params(k_par, depth, dim, heads, dim_head, mlp_dim)

    out, scores = vision_transformer_forward(src, pos_emb, params,
                                             heads=heads, dim_head=dim_head,
                                             mlp_dim=mlp_dim)
    out = jax.block_until_ready(out)
    attn = jax.block_until_ready(scores["self_attention"])

    # Cross-check against a full-precision JAX reference (the kernel uses bf16 MXU
    # matmuls, so tolerances are loosened accordingly — that is the accuracy contract).
    ref = src
    ref_attn = None
    for p in params:
        ref, ref_attn = _layer_ref(ref, pos_emb[0], pos_emb[1], p,
                                   heads, dim_head, mlp_dim)
    np.testing.assert_allclose(np.asarray(out), np.asarray(ref), rtol=3e-2, atol=3e-2)
    np.testing.assert_allclose(np.asarray(attn), np.asarray(ref_attn), rtol=3e-2, atol=3e-2)

    print("KERNEL_OK")
</pallas_src>

<mosaic_0001>
module attributes {stable_mosaic.version = 11 : i64} {
  func.func @_vit_kernel(%arg0: i32, %arg1: i32, %arg2: memref<32x32xf32, #tpu.memory_space<vmem>>, %arg3: memref<32x8xf32, #tpu.memory_space<vmem>>, %arg4: memref<32x8xf32, #tpu.memory_space<vmem>>, %arg5: memref<1x1x32xf32, #tpu.memory_space<vmem>>, %arg6: memref<1x1x32xf32, #tpu.memory_space<vmem>>, %arg7: memref<1x32x160xbf16, #tpu.memory_space<vmem>>, %arg8: memref<1x32x32xbf16, #tpu.memory_space<vmem>>, %arg9: memref<1x1x32xf32, #tpu.memory_space<vmem>>, %arg10: memref<1x1x32xf32, #tpu.memory_space<vmem>>, %arg11: memref<1x1x32xf32, #tpu.memory_space<vmem>>, %arg12: memref<1x32x128xbf16, #tpu.memory_space<vmem>>, %arg13: memref<1x1x128xf32, #tpu.memory_space<vmem>>, %arg14: memref<1x64x32xbf16, #tpu.memory_space<vmem>>, %arg15: memref<1x1x32xf32, #tpu.memory_space<vmem>>, %arg16: memref<32x32xf32, #tpu.memory_space<vmem>>, %arg17: memref<1x8x16x16xf32, #tpu.memory_space<vmem>>, %arg18: memref<32x32xf32, #tpu.memory_space<vmem>>) attributes {dimension_semantics = [#tpu.dimension_semantics<parallel>, #tpu.dimension_semantics<arbitrary>], iteration_bounds = array<i64: 1, 2>, scalar_prefetch = 0 : i64, scratch_operands = 1 : i64, tpu.core_type = #tpu.core_type<tc>, window_params = [{transform_indices = @transform_0, window_bounds = array<i64: 32, 32>}, {transform_indices = @transform_1, window_bounds = array<i64: 32, 8>}, {transform_indices = @transform_2, window_bounds = array<i64: 32, 8>}, {transform_indices = @transform_3, window_bounds = array<i64: 1, 1, 32>}, {transform_indices = @transform_4, window_bounds = array<i64: 1, 1, 32>}, {transform_indices = @transform_5, window_bounds = array<i64: 1, 32, 160>}, {transform_indices = @transform_6, window_bounds = array<i64: 1, 32, 32>}, {transform_indices = @transform_7, window_bounds = array<i64: 1, 1, 32>}, {transform_indices = @transform_8, window_bounds = array<i64: 1, 1, 32>}, {transform_indices = @transform_9, window_bounds = array<i64: 1, 1, 32>}, {transform_indices = @transform_10, window_bounds = array<i64: 1, 32, 128>}, {transform_indices = @transform_11, window_bounds = array<i64: 1, 1, 128>}, {transform_indices = @transform_12, window_bounds = array<i64: 1, 64, 32>}, {transform_indices = @transform_13, window_bounds = array<i64: 1, 1, 32>}, {transform_indices = @transform_14, window_bounds = array<i64: 32, 32>}, {transform_indices = @transform_15, window_bounds = array<i64: 1, 8, 16, 16>}]} {
    %c0_i32 = arith.constant 0 : i32
    %0 = arith.cmpi eq, %arg1, %c0_i32 : i32
    %1 = arith.extui %0 : i1 to i32
    %c0_i32_0 = arith.constant 0 : i32
    %2 = arith.cmpi ne, %1, %c0_i32_0 : i32
    scf.if %2 {
      %c0_63 = arith.constant 0 : index
      %c0_64 = arith.constant 0 : index
      %162 = vector.load %arg2[%c0_63, %c0_64] : memref<32x32xf32, #tpu.memory_space<vmem>>, vector<32x32xf32>
      %c0_65 = arith.constant 0 : index
      %c0_66 = arith.constant 0 : index
      %163 = vector.load %arg18[%c0_65, %c0_66] : memref<32x32xf32, #tpu.memory_space<vmem>>, vector<32x32xf32>
      tpu.vector_store %arg18[%c0_65, %c0_66], %162 {strides = array<i32>} : memref<32x32xf32, #tpu.memory_space<vmem>>, vector<32x32xf32>,
    } else {
    }
    %c0 = arith.constant 0 : index
    %c0_1 = arith.constant 0 : index
    %3 = vector.load %arg18[%c0, %c0_1] : memref<32x32xf32, #tpu.memory_space<vmem>>, vector<32x32xf32>
    %cst = arith.constant dense<0.000000e+00> : vector<32xf32>
    %4 = vector.multi_reduction <add>, %3, %cst [1] : vector<32x32xf32> to vector<32xf32>
    %5 = vector.shape_cast %4 : vector<32xf32> to vector<32x1xf32>
    %cst_2 = arith.constant 3.200000e+01 : f32
    %6 = vector.broadcast %cst_2 : f32 to vector<32x1xf32>
    %7 = arith.divf %5, %6 : vector<32x1xf32>
    %8 = arith.mulf %3, %3 : vector<32x32xf32>
    %cst_3 = arith.constant dense<0.000000e+00> : vector<32xf32>
    %9 = vector.multi_reduction <add>, %8, %cst_3 [1] : vector<32x32xf32> to vector<32xf32>
    %10 = vector.shape_cast %9 : vector<32xf32> to vector<32x1xf32>
    %cst_4 = arith.constant 3.200000e+01 : f32
    %11 = vector.broadcast %cst_4 : f32 to vector<32x1xf32>
    %12 = arith.divf %10, %11 : vector<32x1xf32>
    %13 = vector.broadcast %7 : vector<32x1xf32> to vector<32x32xf32>
    %14 = arith.subf %3, %13 : vector<32x32xf32>
    %15 = arith.mulf %7, %7 : vector<32x1xf32>
    %16 = arith.subf %12, %15 : vector<32x1xf32>
    %cst_5 = arith.constant 9.99999974E-6 : f32
    %17 = vector.broadcast %cst_5 : f32 to vector<32x1xf32>
    %18 = arith.addf %16, %17 : vector<32x1xf32>
    %19 = math.rsqrt %18 : vector<32x1xf32>
    %20 = vector.broadcast %19 : vector<32x1xf32> to vector<32x32xf32>
    %21 = arith.mulf %14, %20 : vector<32x32xf32>
    %c0_6 = arith.constant 0 : index
    %c0_7 = arith.constant 0 : index
    %c0_8 = arith.constant 0 : index
    %22 = vector.load %arg5[%c0_6, %c0_7, %c0_8] : memref<1x1x32xf32, #tpu.memory_space<vmem>>, vector<1x1x32xf32>
    %23 = vector.shape_cast %22 : vector<1x1x32xf32> to vector<1x32xf32>
    %24 = vector.broadcast %23 : vector<1x32xf32> to vector<32x32xf32>
    %25 = arith.mulf %21, %24 : vector<32x32xf32>
    %c0_9 = arith.constant 0 : index
    %c0_10 = arith.constant 0 : index
    %c0_11 = arith.constant 0 : index
    %26 = vector.load %arg6[%c0_9, %c0_10, %c0_11] : memref<1x1x32xf32, #tpu.memory_space<vmem>>, vector<1x1x32xf32>
    %27 = vector.shape_cast %26 : vector<1x1x32xf32> to vector<1x32xf32>
    %28 = vector.broadcast %27 : vector<1x32xf32> to vector<32x32xf32>
    %29 = arith.addf %25, %28 : vector<32x32xf32>
    %30 = arith.truncf %29 : vector<32x32xf32> to vector<32x32xbf16>
    %c0_12 = arith.constant 0 : index
    %c0_13 = arith.constant 0 : index
    %c0_14 = arith.constant 0 : index
    %31 = vector.load %arg7[%c0_12, %c0_13, %c0_14] : memref<1x32x160xbf16, #tpu.memory_space<vmem>>, vector<1x32x160xbf16>
    %32 = vector.shape_cast %31 : vector<1x32x160xbf16> to vector<32x160xbf16>
    %cst_15 = arith.constant dense<0.000000e+00> : vector<32x160xf32>
    %33 = tpu.matmul %30, %32, %cst_15 {dimension_numbers = #tpu.dot_dimension_numbers<[1], [0], [0], [1], [0, 0, 1, 1], [], []>} : vector<32x32xbf16>, vector<32x160xbf16>, vector<32x160xf32> -> vector<32x160xf32>
    %34 = vector.extract_strided_slice %33 {offsets = [0, 0], sizes = [32, 40], strides = [1, 1]} : vector<32x160xf32> to vector<32x40xf32>
    %35 = vector.extract_strided_slice %33 {offsets = [0, 40], sizes = [32, 40], strides = [1, 1]} : vector<32x160xf32> to vector<32x40xf32>
    %36 = vector.extract_strided_slice %33 {offsets = [0, 80], sizes = [32, 40], strides = [1, 1]} : vector<32x160xf32> to vector<32x40xf32>
    %37 = vector.extract_strided_slice %33 {offsets = [0, 120], sizes = [32, 40], strides = [1, 1]} : vector<32x160xf32> to vector<32x40xf32>
    %38 = vector.shape_cast %34 : vector<32x40xf32> to vector<1x32x40xf32>
    %39 = vector.shape_cast %35 : vector<32x40xf32> to vector<1x32x40xf32>
    %40 = vector.shape_cast %36 : vector<32x40xf32> to vector<1x32x40xf32>
    %41 = vector.shape_cast %37 : vector<32x40xf32> to vector<1x32x40xf32>
    %42 = tpu.concatenate %38, %39, %40, %41 in 0 : vector<1x32x40xf32>, vector<1x32x40xf32>, vector<1x32x40xf32>, vector<1x32x40xf32> -> vector<4x32x40xf32>
    %c0_16 = arith.constant 0 : index
    %c0_17 = arith.constant 0 : index
    %43 = vector.load %arg3[%c0_16, %c0_17] : memref<32x8xf32, #tpu.memory_space<vmem>>, vector<32x8xf32>
    %44 = vector.shape_cast %43 : vector<32x8xf32> to vector<1x32x8xf32>
    %c0_18 = arith.constant 0 : index
    %c0_19 = arith.constant 0 : index
    %45 = vector.load %arg4[%c0_18, %c0_19] : memref<32x8xf32, #tpu.memory_space<vmem>>, vector<32x8xf32>
    %46 = vector.shape_cast %45 : vector<32x8xf32> to vector<1x32x8xf32>
    %47 = vector.extract_strided_slice %42 {offsets = [0, 0, 0], sizes = [4, 32, 8], strides = [1, 1, 1]} : vector<4x32x40xf32> to vector<4x32x8xf32>
    %48 = vector.broadcast %46 : vector<1x32x8xf32> to vector<4x32x8xf32>
    %49 = arith.mulf %47, %48 : vector<4x32x8xf32>
    %50 = vector.extract_strided_slice %42 {offsets = [0, 0, 24], sizes = [4, 32, 8], strides = [1, 1, 1]} : vector<4x32x40xf32> to vector<4x32x8xf32>
    %51 = vector.broadcast %44 : vector<1x32x8xf32> to vector<4x32x8xf32>
    %52 = arith.mulf %50, %51 : vector<4x32x8xf32>
    %53 = arith.addf %49, %52 : vector<4x32x8xf32>
    %54 = arith.truncf %53 : vector<4x32x8xf32> to vector<4x32x8xbf16>
    %55 = vector.extract_strided_slice %42 {offsets = [0, 0, 8], sizes = [4, 32, 8], strides = [1, 1, 1]} : vector<4x32x40xf32> to vector<4x32x8xf32>
    %56 = vector.broadcast %46 : vector<1x32x8xf32> to vector<4x32x8xf32>
    %57 = arith.mulf %55, %56 : vector<4x32x8xf32>
    %58 = vector.extract_strided_slice %42 {offsets = [0, 0, 32], sizes = [4, 32, 8], strides = [1, 1, 1]} : vector<4x32x40xf32> to vector<4x32x8xf32>
    %59 = vector.broadcast %44 : vector<1x32x8xf32> to vector<4x32x8xf32>
    %60 = arith.mulf %58, %59 : vector<4x32x8xf32>
    %61 = arith.addf %57, %60 : vector<4x32x8xf32>
    %62 = arith.truncf %61 : vector<4x32x8xf32> to vector<4x32x8xbf16>
    %63 = vector.extract_strided_slice %42 {offsets = [0, 0, 16], sizes = [4, 32, 8], strides = [1, 1, 1]} : vector<4x32x40xf32> to vector<4x32x8xf32>
    %64 = arith.truncf %63 : vector<4x32x8xf32> to vector<4x32x8xbf16>
    %65 = vector.shape_cast %54 : vector<4x32x8xbf16> to vector<8x16x8xbf16>
    %66 = vector.shape_cast %62 : vector<4x32x8xbf16> to vector<8x16x8xbf16>
    %67 = vector.shape_cast %64 : vector<4x32x8xbf16> to vector<8x16x8xbf16>
    "tpu.trace_start"() <{level = 10 : i32, message = "hnd,hmd->hnm"}> : () -> ()
    %cst_20 = arith.constant dense<0.000000e+00> : vector<8x16x16xf32>
    %68 = tpu.matmul %65, %66, %cst_20 {dimension_numbers = #tpu.dot_dimension_numbers<[2], [2], [1], [1], [0, 0, 0, 1, 1, 1], [0], [0]>} : vector<8x16x8xbf16>, vector<8x16x8xbf16>, vector<8x16x16xf32> -> vector<8x16x16xf32>
    "tpu.trace_stop"() : () -> ()
    %cst_21 = arith.constant dense<0xFF800000> : vector<8x16xf32>
    %69 = vector.multi_reduction <maximumf>, %68, %cst_21 [2] : vector<8x16x16xf32> to vector<8x16xf32>
    %70 = vector.shape_cast %69 : vector<8x16xf32> to vector<8x16x1xf32>
    %71 = vector.broadcast %70 : vector<8x16x1xf32> to vector<8x16x16xf32>
    %72 = arith.subf %68, %71 : vector<8x16x16xf32>
    %73 = math.exp %72 : vector<8x16x16xf32>
    %cst_22 = arith.constant dense<0.000000e+00> : vector<8x16xf32>
    %74 = vector.multi_reduction <add>, %73, %cst_22 [2] : vector<8x16x16xf32> to vector<8x16xf32>
    %75 = vector.shape_cast %74 : vector<8x16xf32> to vector<8x16x1xf32>
    %76 = vector.broadcast %75 : vector<8x16x1xf32> to vector<8x16x16xf32>
    %77 = arith.divf %73, %76 : vector<8x16x16xf32>
    %78 = arith.truncf %77 : vector<8x16x16xf32> to vector<8x16x16xbf16>
    "tpu.trace_start"() <{level = 10 : i32, message = "hnm,hmd->hnd"}> : () -> ()
    %cst_23 = arith.constant dense<0.000000e+00> : vector<8x16x8xf32>
    %79 = tpu.matmul %78, %67, %cst_23 {dimension_numbers = #tpu.dot_dimension_numbers<[2], [1], [1], [2], [0, 0, 0, 1, 1, 2], [0], [0]>} : vector<8x16x16xbf16>, vector<8x16x8xbf16>, vector<8x16x8xf32> -> vector<8x16x8xf32>
    "tpu.trace_stop"() : () -> ()
    %80 = arith.truncf %79 : vector<8x16x8xf32> to vector<8x16x8xbf16>
    %81 = vector.shape_cast %80 : vector<8x16x8xbf16> to vector<4x32x8xbf16>
    %82 = vector.extract_strided_slice %81 {offsets = [0, 0, 0], sizes = [1, 32, 8], strides = [1, 1, 1]} : vector<4x32x8xbf16> to vector<1x32x8xbf16>
    %83 = vector.shape_cast %82 : vector<1x32x8xbf16> to vector<32x8xbf16>
    %84 = vector.extract_strided_slice %81 {offsets = [1, 0, 0], sizes = [1, 32, 8], strides = [1, 1, 1]} : vector<4x32x8xbf16> to vector<1x32x8xbf16>
    %85 = vector.shape_cast %84 : vector<1x32x8xbf16> to vector<32x8xbf16>
    %86 = vector.extract_strided_slice %81 {offsets = [2, 0, 0], sizes = [1, 32, 8], strides = [1, 1, 1]} : vector<4x32x8xbf16> to vector<1x32x8xbf16>
    %87 = vector.shape_cast %86 : vector<1x32x8xbf16> to vector<32x8xbf16>
    %88 = vector.extract_strided_slice %81 {offsets = [3, 0, 0], sizes = [1, 32, 8], strides = [1, 1, 1]} : vector<4x32x8xbf16> to vector<1x32x8xbf16>
    %89 = vector.shape_cast %88 : vector<1x32x8xbf16> to vector<32x8xbf16>
    %90 = tpu.concatenate %83, %85, %87, %89 in 1 : vector<32x8xbf16>, vector<32x8xbf16>, vector<32x8xbf16>, vector<32x8xbf16> -> vector<32x32xbf16>
    %c0_24 = arith.constant 0 : index
    %c0_25 = arith.constant 0 : index
    %c0_26 = arith.constant 0 : index
    %91 = vector.load %arg8[%c0_24, %c0_25, %c0_26] : memref<1x32x32xbf16, #tpu.memory_space<vmem>>, vector<1x32x32xbf16>
    %92 = vector.shape_cast %91 : vector<1x32x32xbf16> to vector<32x32xbf16>
    %cst_27 = arith.constant dense<0.000000e+00> : vector<32x32xf32>
    %93 = tpu.matmul %90, %92, %cst_27 {dimension_numbers = #tpu.dot_dimension_numbers<[1], [0], [0], [1], [0, 0, 1, 1], [], []>} : vector<32x32xbf16>, vector<32x32xbf16>, vector<32x32xf32> -> vector<32x32xf32>
    %c0_28 = arith.constant 0 : index
    %c0_29 = arith.constant 0 : index
    %c0_30 = arith.constant 0 : index
    %94 = vector.load %arg9[%c0_28, %c0_29, %c0_30] : memref<1x1x32xf32, #tpu.memory_space<vmem>>, vector<1x1x32xf32>
    %95 = vector.shape_cast %94 : vector<1x1x32xf32> to vector<1x32xf32>
    %96 = vector.broadcast %95 : vector<1x32xf32> to vector<32x32xf32>
    %97 = arith.addf %93, %96 : vector<32x32xf32>
    %98 = arith.addf %97, %3 : vector<32x32xf32>
    %cst_31 = arith.constant dense<0.000000e+00> : vector<32xf32>
    %99 = vector.multi_reduction <add>, %98, %cst_31 [1] : vector<32x32xf32> to vector<32xf32>
    %100 = vector.shape_cast %99 : vector<32xf32> to vector<32x1xf32>
    %cst_32 = arith.constant 3.200000e+01 : f32
    %101 = vector.broadcast %cst_32 : f32 to vector<32x1xf32>
    %102 = arith.divf %100, %101 : vector<32x1xf32>
    %103 = arith.mulf %98, %98 : vector<32x32xf32>
    %cst_33 = arith.constant dense<0.000000e+00> : vector<32xf32>
    %104 = vector.multi_reduction <add>, %103, %cst_33 [1] : vector<32x32xf32> to vector<32xf32>
    %105 = vector.shape_cast %104 : vector<32xf32> to vector<32x1xf32>
    %cst_34 = arith.constant 3.200000e+01 : f32
    %106 = vector.broadcast %cst_34 : f32 to vector<32x1xf32>
    %107 = arith.divf %105, %106 : vector<32x1xf32>
    %108 = vector.broadcast %102 : vector<32x1xf32> to vector<32x32xf32>
    %109 = arith.subf %98, %108 : vector<32x32xf32>
    %110 = arith.mulf %102, %102 : vector<32x1xf32>
    %111 = arith.subf %107, %110 : vector<32x1xf32>
    %cst_35 = arith.constant 9.99999974E-6 : f32
    %112 = vector.broadcast %cst_35 : f32 to vector<32x1xf32>
    %113 = arith.addf %111, %112 : vector<32x1xf32>
    %114 = math.rsqrt %113 : vector<32x1xf32>
    %115 = vector.broadcast %114 : vector<32x1xf32> to vector<32x32xf32>
    %116 = arith.mulf %109, %115 : vector<32x32xf32>
    %c0_36 = arith.constant 0 : index
    %c0_37 = arith.constant 0 : index
    %c0_38 = arith.constant 0 : index
    %117 = vector.load %arg10[%c0_36, %c0_37, %c0_38] : memref<1x1x32xf32, #tpu.memory_space<vmem>>, vector<1x1x32xf32>
    %118 = vector.shape_cast %117 : vector<1x1x32xf32> to vector<1x32xf32>
    %119 = vector.broadcast %118 : vector<1x32xf32> to vector<32x32xf32>
    %120 = arith.mulf %116, %119 : vector<32x32xf32>
    %c0_39 = arith.constant 0 : index
    %c0_40 = arith.constant 0 : index
    %c0_41 = arith.constant 0 : index
    %121 = vector.load %arg11[%c0_39, %c0_40, %c0_41] : memref<1x1x32xf32, #tpu.memory_space<vmem>>, vector<1x1x32xf32>
    %122 = vector.shape_cast %121 : vector<1x1x32xf32> to vector<1x32xf32>
    %123 = vector.broadcast %122 : vector<1x32xf32> to vector<32x32xf32>
    %124 = arith.addf %120, %123 : vector<32x32xf32>
    %125 = arith.truncf %124 : vector<32x32xf32> to vector<32x32xbf16>
    %c0_42 = arith.constant 0 : index
    %c0_43 = arith.constant 0 : index
    %c0_44 = arith.constant 0 : index
    %126 = vector.load %arg12[%c0_42, %c0_43, %c0_44] : memref<1x32x128xbf16, #tpu.memory_space<vmem>>, vector<1x32x128xbf16>
    %127 = vector.shape_cast %126 : vector<1x32x128xbf16> to vector<32x128xbf16>
    %cst_45 = arith.constant dense<0.000000e+00> : vector<32x128xf32>
    %128 = tpu.matmul %125, %127, %cst_45 {dimension_numbers = #tpu.dot_dimension_numbers<[1], [0], [0], [1], [0, 0, 1, 1], [], []>} : vector<32x32xbf16>, vector<32x128xbf16>, vector<32x128xf32> -> vector<32x128xf32>
    %c0_46 = arith.constant 0 : index
    %c0_47 = arith.constant 0 : index
    %c0_48 = arith.constant 0 : index
    %129 = vector.load %arg13[%c0_46, %c0_47, %c0_48] : memref<1x1x128xf32, #tpu.memory_space<vmem>>, vector<1x1x128xf32>
    %130 = vector.shape_cast %129 : vector<1x1x128xf32> to vector<1x128xf32>
    %131 = vector.broadcast %130 : vector<1x128xf32> to vector<32x128xf32>
    %132 = arith.addf %128, %131 : vector<32x128xf32>
    %133 = vector.extract_strided_slice %132 {offsets = [0, 0], sizes = [32, 64], strides = [1, 1]} : vector<32x128xf32> to vector<32x64xf32>
    %134 = vector.extract_strided_slice %132 {offsets = [0, 64], sizes = [32, 64], strides = [1, 1]} : vector<32x128xf32> to vector<32x64xf32>
    %135 = arith.mulf %134, %134 : vector<32x64xf32>
    %136 = arith.mulf %134, %135 : vector<32x64xf32>
    %cst_49 = arith.constant 4.471500e-02 : f32
    %137 = vector.broadcast %cst_49 : f32 to vector<32x64xf32>
    %138 = arith.mulf %137, %136 : vector<32x64xf32>
    %139 = arith.addf %134, %138 : vector<32x64xf32>
    %cst_50 = arith.constant 0.797884583 : f32
    %140 = vector.broadcast %cst_50 : f32 to vector<32x64xf32>
    %141 = arith.mulf %140, %139 : vector<32x64xf32>
    %142 = math.tanh %141 : vector<32x64xf32>
    %cst_51 = arith.constant 1.000000e+00 : f32
    %143 = vector.broadcast %cst_51 : f32 to vector<32x64xf32>
    %144 = arith.addf %143, %142 : vector<32x64xf32>
    %cst_52 = arith.constant 5.000000e-01 : f32
    %145 = vector.broadcast %cst_52 : f32 to vector<32x64xf32>
    %146 = arith.mulf %145, %144 : vector<32x64xf32>
    %147 = arith.mulf %134, %146 : vector<32x64xf32>
    %148 = arith.mulf %133, %147 : vector<32x64xf32>
    %149 = arith.truncf %148 : vector<32x64xf32> to vector<32x64xbf16>
    %c0_53 = arith.constant 0 : index
    %c0_54 = arith.constant 0 : index
    %c0_55 = arith.constant 0 : index
    %150 = vector.load %arg14[%c0_53, %c0_54, %c0_55] : memref<1x64x32xbf16, #tpu.memory_space<vmem>>, vector<1x64x32xbf16>
    %151 = vector.shape_cast %150 : vector<1x64x32xbf16> to vector<64x32xbf16>
    %cst_56 = arith.constant dense<0.000000e+00> : vector<32x32xf32>
    %152 = tpu.matmul %149, %151, %cst_56 {dimension_numbers = #tpu.dot_dimension_numbers<[1], [0], [0], [1], [0, 0, 1, 1], [], []>} : vector<32x64xbf16>, vector<64x32xbf16>, vector<32x32xf32> -> vector<32x32xf32>
    %c0_57 = arith.constant 0 : index
    %c0_58 = arith.constant 0 : index
    %c0_59 = arith.constant 0 : index
    %153 = vector.load %arg15[%c0_57, %c0_58, %c0_59] : memref<1x1x32xf32, #tpu.memory_space<vmem>>, vector<1x1x32xf32>
    %154 = vector.shape_cast %153 : vector<1x1x32xf32> to vector<1x32xf32>
    %155 = vector.broadcast %154 : vector<1x32xf32> to vector<32x32xf32>
    %156 = arith.addf %152, %155 : vector<32x32xf32>
    %157 = arith.addf %156, %98 : vector<32x32xf32>
    %c0_60 = arith.constant 0 : index
    %c0_61 = arith.constant 0 : index
    %158 = vector.load %arg18[%c0_60, %c0_61] : memref<32x32xf32, #tpu.memory_space<vmem>>, vector<32x32xf32>
    tpu.vector_store %arg18[%c0_60, %c0_61], %157 {strides = array<i32>} : memref<32x32xf32, #tpu.memory_space<vmem>>, vector<32x32xf32>,
    %c1_i32 = arith.constant 1 : i32
    %159 = arith.cmpi eq, %arg1, %c1_i32 : i32
    %160 = arith.extui %159 : i1 to i32
    %c0_i32_62 = arith.constant 0 : i32
    %161 = arith.cmpi ne, %160, %c0_i32_62 : i32
    scf.if %161 {
      %c0_63 = arith.constant 0 : index
      %c0_64 = arith.constant 0 : index
      %162 = vector.load %arg16[%c0_63, %c0_64] : memref<32x32xf32, #tpu.memory_space<vmem>>, vector<32x32xf32>
      tpu.vector_store %arg16[%c0_63, %c0_64], %157 {strides = array<i32>} : memref<32x32xf32, #tpu.memory_space<vmem>>, vector<32x32xf32>,
      %c0_65 = arith.constant 0 : index
      %c0_66 = arith.constant 0 : index
      %c0_67 = arith.constant 0 : index
      %c0_68 = arith.constant 0 : index
      %163 = vector.load %arg17[%c0_65, %c0_66, %c0_67, %c0_68] : memref<1x8x16x16xf32, #tpu.memory_space<vmem>>, vector<1x8x16x16xf32>
      %164 = vector.shape_cast %163 : vector<1x8x16x16xf32> to vector<8x16x16xf32>
      %165 = vector.shape_cast %77 : vector<8x16x16xf32> to vector<1x8x16x16xf32>
      tpu.vector_store %arg17[%c0_65, %c0_66, %c0_67, %c0_68], %165 {strides = array<i32>} : memref<1x8x16x16xf32, #tpu.memory_space<vmem>>, vector<1x8x16x16xf32>,
    } else {
    }
    return
  }
  func.func @transform_0(%arg0: i32, %arg1: i32) -> (i32, i32) {
    %c0_i32 = arith.constant 0 : i32
    %c0_i32_0 = arith.constant 0 : i32
    return %arg0, %c0_i32 : i32, i32
  }
  func.func @transform_1(%arg0: i32, %arg1: i32) -> (i32, i32) {
    %c0_i32 = arith.constant 0 : i32
    %c0_i32_0 = arith.constant 0 : i32
    return %arg0, %c0_i32 : i32, i32
  }
  func.func @transform_2(%arg0: i32, %arg1: i32) -> (i32, i32) {
    %c0_i32 = arith.constant 0 : i32
    %c0_i32_0 = arith.constant 0 : i32
    return %arg0, %c0_i32 : i32, i32
  }
  func.func @transform_3(%arg0: i32, %arg1: i32) -> (i32, i32, i32) {
    %c0_i32 = arith.constant 0 : i32
    %c0_i32_0 = arith.constant 0 : i32
    %c0_i32_1 = arith.constant 0 : i32
    return %arg1, %c0_i32, %c0_i32_0 : i32, i32, i32
  }
  func.func @transform_4(%arg0: i32, %arg1: i32) -> (i32, i32, i32) {
    %c0_i32 = arith.constant 0 : i32
    %c0_i32_0 = arith.constant 0 : i32
    %c0_i32_1 = arith.constant 0 : i32
    return %arg1, %c0_i32, %c0_i32_0 : i32, i32, i32
  }
  func.func @transform_5(%arg0: i32, %arg1: i32) -> (i32, i32, i32) {
    %c0_i32 = arith.constant 0 : i32
    %c0_i32_0 = arith.constant 0 : i32
    %c0_i32_1 = arith.constant 0 : i32
    return %arg1, %c0_i32, %c0_i32_0 : i32, i32, i32
  }
  func.func @transform_6(%arg0: i32, %arg1: i32) -> (i32, i32, i32) {
    %c0_i32 = arith.constant 0 : i32
    %c0_i32_0 = arith.constant 0 : i32
    %c0_i32_1 = arith.constant 0 : i32
    return %arg1, %c0_i32, %c0_i32_0 : i32, i32, i32
  }
  func.func @transform_7(%arg0: i32, %arg1: i32) -> (i32, i32, i32) {
    %c0_i32 = arith.constant 0 : i32
    %c0_i32_0 = arith.constant 0 : i32
    %c0_i32_1 = arith.constant 0 : i32
    return %arg1, %c0_i32, %c0_i32_0 : i32, i32, i32
  }
  func.func @transform_8(%arg0: i32, %arg1: i32) -> (i32, i32, i32) {
    %c0_i32 = arith.constant 0 : i32
    %c0_i32_0 = arith.constant 0 : i32
    %c0_i32_1 = arith.constant 0 : i32
    return %arg1, %c0_i32, %c0_i32_0 : i32, i32, i32
  }
  func.func @transform_9(%arg0: i32, %arg1: i32) -> (i32, i32, i32) {
    %c0_i32 = arith.constant 0 : i32
    %c0_i32_0 = arith.constant 0 : i32
    %c0_i32_1 = arith.constant 0 : i32
    return %arg1, %c0_i32, %c0_i32_0 : i32, i32, i32
  }
  func.func @transform_10(%arg0: i32, %arg1: i32) -> (i32, i32, i32) {
    %c0_i32 = arith.constant 0 : i32
    %c0_i32_0 = arith.constant 0 : i32
    %c0_i32_1 = arith.constant 0 : i32
    return %arg1, %c0_i32, %c0_i32_0 : i32, i32, i32
  }
  func.func @transform_11(%arg0: i32, %arg1: i32) -> (i32, i32, i32) {
    %c0_i32 = arith.constant 0 : i32
    %c0_i32_0 = arith.constant 0 : i32
    %c0_i32_1 = arith.constant 0 : i32
    return %arg1, %c0_i32, %c0_i32_0 : i32, i32, i32
  }
  func.func @transform_12(%arg0: i32, %arg1: i32) -> (i32, i32, i32) {
    %c0_i32 = arith.constant 0 : i32
    %c0_i32_0 = arith.constant 0 : i32
    %c0_i32_1 = arith.constant 0 : i32
    return %arg1, %c0_i32, %c0_i32_0 : i32, i32, i32
  }
  func.func @transform_13(%arg0: i32, %arg1: i32) -> (i32, i32, i32) {
    %c0_i32 = arith.constant 0 : i32
    %c0_i32_0 = arith.constant 0 : i32
    %c0_i32_1 = arith.constant 0 : i32
    return %arg1, %c0_i32, %c0_i32_0 : i32, i32, i32
  }
  func.func @transform_14(%arg0: i32, %arg1: i32) -> (i32, i32) {
    %c0_i32 = arith.constant 0 : i32
    %c0_i32_0 = arith.constant 0 : i32
    return %arg0, %c0_i32 : i32, i32
  }
  func.func @transform_15(%arg0: i32, %arg1: i32) -> (i32, i32, i32, i32) {
    %c0_i32 = arith.constant 0 : i32
    %c0_i32_0 = arith.constant 0 : i32
    %c0_i32_1 = arith.constant 0 : i32
    %c0_i32_2 = arith.constant 0 : i32
    return %arg0, %c0_i32, %c0_i32_0, %c0_i32_1 : i32, i32, i32, i32
  }
}

</mosaic_0001>

<bundles_post_ra>
// kernel: tpu_custom_call.1
= control target key start
LH: loop header
LB: loop body
LE: loop exit
PB: predicated region body
PF: predicated region fallthrough
CT: control target
= control target key end

     0   :  { %s4665_s0 = inlined_call_operand.vmem [shape: f32[32,32], index: 0, kind: input, shape index: {}]   ;;  %s4666_s1 = inlined_call_operand.vmem [shape: f32[32,8], index: 1, kind: input, shape index: {}]   ;;  %s4667_s2 = inlined_call_operand.vmem [shape: f32[32,8], index: 2, kind: input, shape index: {}]   ;;  %s4668_s3 = inlined_call_operand.vmem [shape: f32[2,1,32], index: 3, kind: input, shape index: {}]   ;;  %s4669_s4 = inlined_call_operand.hbm [shape: f32[2,1,32], index: 4, kind: input, shape index: {}]   ;;  %s4670_s5 = inlined_call_operand.vmem [shape: bf16[2,32,160], index: 5, kind: input, shape index: {}]   ;;  %s4671_s6 = inlined_call_operand.vmem [shape: bf16[2,32,32], index: 6, kind: input, shape index: {}]   ;;  %s4672_s7 = inlined_call_operand.vmem [shape: f32[2,1,32], index: 7, kind: input, shape index: {}]   ;;  %s4673_s8 = inlined_call_operand.vmem [shape: f32[2,1,32], index: 8, kind: input, shape index: {}]   ;;  %s4674_s9 = inlined_call_operand.vmem [shape: f32[2,1,32], index: 9, kind: input, shape index: {}]   ;;  %s4675_s10 = inlined_call_operand.vmem [shape: bf16[2,32,128], index: 10, kind: input, shape index: {}]   ;;  %s4676_s11 = inlined_call_operand.vmem [shape: f32[2,1,128], index: 11, kind: input, shape index: {}]   ;;  %s4677_s12 = inlined_call_operand.vmem [shape: bf16[2,64,32], index: 12, kind: input, shape index: {}]   ;;  %s4678_s13 = inlined_call_operand.vmem [shape: f32[2,1,32], index: 13, kind: input, shape index: {}]   ;;  %s4679_s14 = inlined_call_operand.hbm [shape: f32[32,32], index: 14, kind: output, shape index: {0}]   ;;  %s4680_s15 = inlined_call_operand.hbm [shape: f32[1,8,16,16], index: 15, kind: output, shape index: {1}]  }
   0x1   :  { %4691 = sst [smem:[#allocation19_spill]] %s4667_s2 }
   0x2   :  { %4692 = sst [smem:[#allocation20_spill]] %s4668_s3 }
   0x3   :  { %4693 = sst [smem:[#allocation21_spill]] %s4669_s4 }
   0x4   :  { %4694 = sst [smem:[#allocation22_spill]] %s4670_s5 }
   0x5   :  { %4695 = sst [smem:[#allocation23_spill]] %s4671_s6 }
   0x6   :  { %4696 = sst [smem:[#allocation24_spill]] %s4679_s14 }
   0x7   :  { %4697 = sst [smem:[#allocation25_spill]] %s4680_s15 }
   0x8   :  { %21 = vsyncpa [#allocation4], 0 }
   0x9   :  { %23 = vsyncpa [#allocation4 + $0x1], 0 }
   0xa   :  { %24 = vsyncpa [#allocation5], 0 }
   0xb   :  { %25 = vsyncpa [#allocation8], 0  ;;  %s3647_s18 = smov 0   ;;  %s3649_s19 = smov 0  }
   0xc   :  { %s3651_s20 = smov 0   ;;  %s3653_s21 = smov 0  }
   0xd   :  { %s3655_s22 = smov 0   ;;  %s3657_s23 = smov 0  }
   0xe LB: > { %4698 = sst [smem:[#allocation12_spill]] %s3532_s19  ;;  %s4684_s24 = sadd.s32 4294967295, %s3548_s23   ;;  %s3548_s23 = sphi %s3657_s23, %s31_s23   ;;  %s3544_s22 = sphi %s3655_s22, %s4731_s22   ;;  %s3540_s21 = sphi %s3653_s21, %s4730_s21   ;;  %s3536_s20 = sphi %s3651_s20, %s4729_s20   ;;  %s3532_s19 = sphi %s3649_s19, %s4728_s19   ;;  %s3528_s18 = sphi %s3647_s18, %s4727_s18  }
   0xf   : > { %4699 = sst [smem:[#allocation13_spill]] %s3536_s20  ;;  %s40_s25 = sadd.s32 1, %s3544_s22 }
  0x10   : > { %4700 = sst [smem:[#allocation14_spill]] %s3544_s22  ;;  %p41_p0 = scmp.ge.s32.totalorder %s40_s25, 2 }
  0x11   : > { %4701 = sst [smem:[#allocation15_spill]] %s3548_s23  ;;  %s154_s26 = sadd.s32 1, %s3536_s20 }
  0x12   : > { %p161_p1 = scmp.ne.s32.totalorder %s3536_s20, %s3532_s19  ;;  %p162_p2 = scmp.eq.s32.totalorder %s3548_s23, 0 }
  0x13   : > { %s4733_s25 = smov (%p41_p0, %s40_s25), 0  ;;  %p167_p4 = scmp.ne.s32.totalorder %s3532_s19, %s3528_s18 }
  0x14   : > { %4702 = sst [smem:[#allocation16_spill]] %s4733_s25  ;;  %p3683_p3 = por %p162_p2, %p161_p1 }
  0x15   : > { %s151_s28 = ssub.s32 %s3544_s22, %s4733_s25  ;;  %p168_p5 = scmp.eq.s32.totalorder %s4684_s24, 0 }
  0x16   : > { %p152_p6 = scmp.eq.s32.totalorder %s151_s28, 0  ;;  %p3233_p8 = scmp.lt.s32.totalorder %s3548_s23, 2 }
  0x17   : > { %p3692_p7 = por %p168_p5, %p167_p4  ;;  %s510_s16 = sand.u32 1, %s3536_s20  }
  0x18   : > { %s3698_s30 = scalar_select %p152_p6, %s3536_s20, %s154_s26  }
  0x19   : > { %s2980_s17 = sshll.u32 %s3544_s22, 4  ;;  %s4706_s4 = sld [smem:[#allocation21_spill]] }
  0x1a   : > { %4705 = sst [smem:[#allocation17_spill]] %s3698_s30  ;;  %s513_s18 = scalar_lea.vmem [#allocation3], %s510_s16 }
  0x1b   : > { %s520_s28 = sshll.u32 %s513_s18, 4  ;;  %p3711_p9 = pnand %p3233_p8, %p3683_p3  ;;  %s3707_s28 = int_to_ptr.vmem [resolvable:$true] %s520_s28 }
  0x1c   : > { %s511_s14 = scalar_lea.sflag [#allocation4], %s510_s16 }
  0x1d   : > { %p3410_p13 = pneg %p3711_p9 }
  0x1f   : > { %s3705_s2 = scalar_lea.hbm %s4706_s4, %s2980_s17  ;;  %s3413_s27 = scalar_lea.hbm %s4706_s4, 32 }
  0x20   : > { %s3408_s15 = scalar_lea.hbm %s3705_s2, 16  ;;  %p3414_p2 = scmp.lt.u32.totalorder %s3705_s2, %s4706_s4 }
  0x21   : > { %p3409_p12 = scmp.ne.s32.totalorder %s3705_s2, %s3408_s15  ;;  %p3415_p3 = scmp.lt.u32.totalorder %s3413_s27, %s3408_s15 }
  0x22   : > { %p3417_p5 = scmp.lt.u32.totalorder %s3408_s15, %s3705_s2 }
  0x23   : > { %p3411_p0 = pnand %p3410_p13, %p3409_p12  ;;  %p3416_p4 = por %p3415_p3, %p3414_p2 }
  0x25   : > { %p3412_p1 = pneg %p3411_p0  ;;  %p3418_p6 = por %p3417_p5, %p3416_p4 }
  0x27   : > { %p3419_p8 = pnand %p3418_p6, %p3412_p1 }
  0x29   : > { %3422 = shalt.err (!%p3419_p8)
}
  0x2a   : > { %s3423_s16 = scalar_lea.vmem %s3707_s28, 16  ;;  %s3550_s26 = smov [#allocation3]  }
  0x2b   : > { %p3424_p12 = scmp.ne.s32.totalorder %s3707_s28, %s3423_s16  ;;  %s3428_s17 = sshll.u32 %s3550_s26, 4  ;;  %s3429_s17 = int_to_ptr.vmem [resolvable:$false] %s3428_s17 }
  0x2c   : > { %s3430_s25 = scalar_lea.vmem %s3429_s17, 32  ;;  %p3431_p11 = scmp.lt.s32.totalorder %s3707_s28, %s3429_s17 }
  0x2d   : > { %p3426_p0 = pnand %p3424_p12, %p3410_p13  ;;  %p3432_p2 = scmp.lt.s32.totalorder %s3430_s25, %s3423_s16 }
  0x2f   : > { %p3427_p10 = pneg %p3426_p0  ;;  %p3433_p3 = por %p3432_p2, %p3431_p11 }
  0x31   : > { %p3434_p4 = pnand %p3433_p3, %p3427_p10 }
  0x33   : > { %3437 = shalt.err (!%p3434_p4)
}
  0x34   : > { %3232 = dma.hbm_to_vmem [thread:$0]  (!%p3711_p9), %s3705_s2, 16, %s3707_s28, %s511_s14  }
  0x35   : > { %p4708_p1 = scmp.lt.s32.totalorder %s3548_s23, 3  ;;  %p4709_p5 = scmp.ge.s32.totalorder %s3548_s23, 1 }
  0x37   : > { %p588_p13 = pnand %p4709_p5, %p4708_p1 }
  0x39   : > { %591 = sbr.rel (%p588_p13) target bundleno = 2828 (0xb0c), region = 76 }
  0x40   : > { %s593_s15 = sand.u32 1, %s3532_s19  }
  0x41   : > { %s594_s27 = scalar_lea.sflag [#allocation4], %s593_s15  ;;  %s3747_s18 = scalar_lea.vmem [#allocation3], %s593_s15 }
  0x42   : > { %3515 = dma.done.wait (%p3692_p7), %s594_s27, 16  }
  0x43   : > { %3517 = vsyncadd (%p3692_p7), %s594_s27, 4294967280  ;;  %p708_p10 = scmp.lt.s32.totalorder %s3540_s21, 1  ;;  %s4711_s5 = sld [smem:[#allocation22_spill]] }
  0x44   : > { %s4712_s6 = sld [smem:[#allocation23_spill]]  ;;  %p2990_p7 = scmp.ne.s32.totalorder %s3540_s21, 0 }
  0x45   : > { %s3755_s24 = scalar_select %p708_p10, %s3540_s21, 1 }
  0x46   : > { %751 = sbr.rel (%p2990_p7) target bundleno = 77 (0x4d), region = 84  ;;  %v752_v0 = vld [vmem:[%s4665_s0] sm:$0xff] (!%p2990_p7)  ;;  %vm756_vm0 = vcmask (!%p2990_p7), 261120   ;;  %v753_v1 = vld [vmem:[%s4665_s0 + $0x8] sm:$0xff] (!%p2990_p7)  ;;  %v754_v2 = vld [vmem:[%s4665_s0 + $0x10] sm:$0xff] (!%p2990_p7) }
  0x47   : > { %s3041_s16 = sshll.u32 %s3755_s24, 5  ;;  %s3042_s25 = sshll.u32 %s3755_s24, 4  ;;  %757 = vst.msk [vmem:[#allocation2] sm:$0xff] (!%p2990_p7), %vm756_vm0, %v752_v0  ;;  %758 = vst.msk [vmem:[#allocation2 + $0x8] sm:$0xff] (!%p2990_p7), %vm756_vm0, %v753_v1  ;;  %v755_v3 = vld [vmem:[%s4665_s0 + $0x18] sm:$0xff] (!%p2990_p7) }
  0x48   : > { %s723_s22 = scalar_lea.vmem %s4672_s7, %s3755_s24  ;;  %s729_s29 = scalar_lea.vmem %s4674_s9, %s3755_s24  ;;  %759 = vst.msk [vmem:[#allocation2 + $0x10] sm:$0xff] (!%p2990_p7), %vm756_vm0, %v754_v2  ;;  %760 = vst.msk [vmem:[#allocation2 + $0x18] sm:$0xff] (!%p2990_p7), %vm756_vm0, %v755_v3 }
  0x49   : > { %s3765_s17 = scalar_lea.vmem %s4711_s5, %s3041_s16  ;;  %s3788_s3 = scalar_lea.vmem %s4675_s10, %s3042_s25 }
  0x4a   : > { %s3771_s4 = scalar_lea.vmem %s4712_s6, %s3042_s25  ;;  %s737_s6 = scalar_lea.vmem %s4676_s11, %s3755_s24 }
  0x4b   : > { %4713 = sst [smem:[#allocation18_spill]] %s3771_s4  ;;  %s3797_s28 = scalar_lea.vmem %s4677_s12, %s3041_s16 }
  0x4c   : > { %s745_s14 = scalar_lea.vmem %s4678_s13, %s3755_s24 }
  0x4d PF: > { %vm765_vm1 = vcmask 261120   ;;  %v3302_v20 = vld [vmem:[%s3765_s17 + $0x4] ss:$8 sps:$4 sm:$0xff]   ;;  %v3304_v21 = vld [vmem:[%s3765_s17] ss:$8 sps:$4 sm:$0xff]   ;;  %v3551_v24 = vmov 0  }
  0x4e   : > { %v3818_v5 = vld [vmem:[#allocation2] sm:$0xff]  ;;  %v3826_v9 = vld [vmem:[#allocation2 + $0x8] sm:$0xff]  ;;  %v3305_v22 = vld [vmem:[%s3765_s17 + $0x14] ss:$8 sps:$4 sm:$0xff]   ;;  %881 = vmatprep.subr.bf16.mxu0 %v3302_v20  ;;  %3215 = vmatprep.subr.bf16.mxu1 %v3302_v20  ;;  %s3552_s19 = smov 32   ;;  %s4714_s16 = sld [smem:[#allocation20_spill]] }
  0x4f   : > { %v3816_v4 = vld [vmem:[#allocation2 + $0x10] sm:$0xff]  ;;  %v3820_v6 = vld [vmem:[#allocation2 + $0x18] sm:$0xff]  ;;  %v766_v8 = vsel %vm765_vm1, %v3818_v5, 0.0  ;;  %v783_v10 = vmul.f32 %v3818_v5, %v3818_v5  ;;  %v784_v11 = vmul.f32 %v3826_v9, %v3826_v9  ;;  %v769_v13 = vsel %vm765_vm1, %v3826_v9, 0.0  ;;  %882 = vmatpush1.bf16.msra.mxu0 %v3304_v21  ;;  %3217 = vmatpush1.bf16.msra.mxu1 %v3304_v21  ;;  %v3851_v25 = vld [vmem:[%s4666_s1 + $0x8] sm:$0xff]  ;;  %s3554_s27 = smov 8  }
  0x50   : > { %v772_v7 = vsel %vm765_vm1, %v3816_v4, 0.0  ;;  %767 = vadd.xlane.f32.xlu0 %v766_v8  ;;  %v775_v12 = vsel %vm765_vm1, %v3820_v6, 0.0  ;;  %v786_v16 = vmul.f32 %v3820_v6, %v3820_v6  ;;  %v785_v17 = vmul.f32 %v3816_v4, %v3816_v4  ;;  %v3307_v23 = vld [vmem:[%s3765_s17 + $0x10] ss:$8 sps:$4 sm:$0xff]   ;;  %883 = vmatprep.subr.bf16.mxu0 %v3305_v22  ;;  %v3856_v26 = vld [vmem:[%s4666_s1] sm:$0xff]  ;;  %s3555_s2 = smov 48  }
  0x51   : > { %773 = vadd.xlane.f32.xlu1 %v772_v7  ;;  %v790_v14 = vsel %vm765_vm1, %v784_v11, 0.0  ;;  %v787_v15 = vsel %vm765_vm1, %v783_v10, 0.0  ;;  %913 = vmatprep.mubr.bf16.mxu0 %v3551_v24  ;;  %v3863_v27 = vld [vmem:[%s4666_s1 + $0x10] sm:$0xff]  ;;  %v3869_v28 = vld [vmem:[%s4666_s1 + $0x18] sm:$0xff]  ;;  %v2992_v0 = vld [vmem:[%s3747_s18] ss:$0 sm:$0xff] }
  0x52   : > { %v796_v18 = vsel %vm765_vm1, %v786_v16, 0.0  ;;  %v793_v19 = vsel %vm765_vm1, %v785_v17, 0.0  ;;  %3216 = vmatprep.subr.bf16.mxu1 %v3305_v22  ;;  %923 = vmatprep.mubr.bf16.mxu1 %v3551_v24  ;;  %s3553_s18 = smov 88   ;;  %s3556_s25 = smov 104   ;;  %vm982_vm2 = vcmask 64512   ;;  %vm3559_vm3 = vmmov 0  }
  0x53   : > { %884 = vmatpush1.bf16.msra.mxu0 %v3307_v23  ;;  %3218 = vmatpush1.bf16.msra.mxu1 %v3307_v23  ;;  %s3557_s26 = smov 24   ;;  %vm1691_vm4 = vcmask 130048   ;;  %s3561_s20 = smov 112   ;;  %vm2296_vm5 = vcmask 195584   ;;  %vm2640_vm6 = vcmask 523264  }
  0x54   : > { %770 = vadd.xlane.f32.xlu0 %v769_v13  ;;  %s4715_s15 = scalar_lea.vmem %s4714_s16, %s3755_s24  ;;  %s4718_s30 = sld [smem:[#allocation18_spill]] }
  0x55   : > { %776 = vadd.xlane.f32.xlu1 %v775_v12  ;;  %v2991_v60 = vld [vmem:[%s4715_s15] ss:$0 sm:$0xff]  ;;  %p3034_p9 = scmp.ne.s32.totalorder %s3540_s21, 1 }
  0x58   : > { %788 = vadd.xlane.f32.xlu0 %v787_v15 }
  0x59   : > { %791 = vadd.xlane.f32.xlu1 %v790_v14 }
  0x5c   : > { %794 = vadd.xlane.f32.xlu0 %v793_v19 }
  0x5d   : > { %797 = vadd.xlane.f32.xlu1 %v796_v18 }
  0x6e   : > { %1169 = vrot.lane.b32.xlu1 %v3851_v25, %s3552_s19 }
  0x72   : > { %1167 = vrot.lane.b32.xlu0 %v3856_v26, %s3552_s19  ;;  %1171 = vrot.lane.b32.xlu1 %v3863_v27, %s3552_s19 }
  0x76   : > { %1173 = vrot.lane.b32.xlu1 %v3869_v28, %s3552_s19  ;;  %s4716_s19 = sld [smem:[#allocation19_spill]] }
  0x7c   : > { %s4717_s17 = smov %s4716_s19 }
  0xdd   : > { %v768_v30 = vpop.xlane.xlu0 %767 }
  0xde   : > { %v774_v29 = vpop.xlane.xlu1 %773  ;;  %v779_v33 = vmul.f32 0.03125, %v768_v30 }
  0xdf   : > { %v781_v35 = vmul.f32 0.03125, %v774_v29 }
  0xe0   : > { %v807_v39 = vmul.f32 %v779_v33, %v779_v33  ;;  %v803_v59 = vsub.f32 %v3818_v5, %v779_v33  ;;  %v3926_v33 = vld [vmem:[%s4717_s17 + $0x8] sm:$0xff] }
  0xe1   : > { %v771_v32 = vpop.xlane.xlu0 %770  ;;  %v809_v45 = vmul.f32 %v781_v35, %v781_v35  ;;  %v805_v7 = vsub.f32 %v3816_v4, %v781_v35 }
  0xe2   : > { %v777_v31 = vpop.xlane.xlu1 %776  ;;  %v780_v34 = vmul.f32 0.03125, %v771_v32  ;;  %v3919_v32 = vld [vmem:[%s4716_s19] sm:$0xff]  ;;  %s3562_s19 = smov 16  }
  0xe3   : > { %v782_v36 = vmul.f32 0.03125, %v777_v31 }
  0xe4   : > { %v808_v40 = vmul.f32 %v780_v34, %v780_v34  ;;  %v804_v57 = vsub.f32 %v3826_v9, %v780_v34 }
  0xe5   : > { %v789_v38 = vpop.xlane.xlu0 %788  ;;  %v810_v46 = vmul.f32 %v782_v36, %v782_v36  ;;  %v806_v1 = vsub.f32 %v3820_v6, %v782_v36  ;;  %v3939_v36 = vld [vmem:[%s4717_s17 + $0x18] sm:$0xff] }
  0xe6   : > { %v792_v37 = vpop.xlane.xlu1 %791  ;;  %v799_v42 = vmul.f32 0.03125, %v789_v38  ;;  %v3946_v38 = vld [vmem:[%s4717_s17 + $0x10] sm:$0xff] }
  0xe7   : > { %v800_v41 = vmul.f32 0.03125, %v792_v37 }
  0xe8   : > { %v811_v44 = vsub.f32 %v799_v42, %v807_v39 }
  0xe9   : > { %v812_v43 = vsub.f32 %v800_v41, %v808_v40  ;;  %v795_v48 = vpop.xlane.xlu0 %794 }
  0xea   : > { %v798_v47 = vpop.xlane.xlu1 %797  ;;  %v815_v50 = vadd.f32 1e-05, %v811_v44  ;;  %v801_v52 = vmul.f32 0.03125, %v795_v48 }
  0xeb   : > { %v816_v49 = vadd.f32 1e-05, %v812_v43  ;;  %v802_v51 = vmul.f32 0.03125, %v798_v47 }
  0xec   : > { %v813_v54 = vsub.f32 %v801_v52, %v809_v45 }
  0xed   : > { %3316 = vrsqrt.f32 %v816_v49  ;;  %v814_v53 = vsub.f32 %v802_v51, %v810_v46  ;;  %v1168_v31 = vpop.permute.xlu0 %1167 }
  0xee   : > { %3318 = vrsqrt.f32 %v815_v50  ;;  %v817_v56 = vadd.f32 1e-05, %v813_v54  ;;  %v1170_v35 = vpop.permute.xlu1 %1169 }
  0xef   : > { %v818_v55 = vadd.f32 1e-05, %v814_v53 }
  0xf1   : > { %3320 = vrsqrt.f32 %v818_v55 }
  0xf2   : > { %3322 = vrsqrt.f32 %v817_v56  ;;  %v1172_v37 = vpop.permute.xlu1 %1171 }
  0xf7   : > { %v3317_v58 = vpop.eup %3316 }
  0xf8   : > { %v3319_v61 = vpop.eup %3318  ;;  %v824_v62 = vmul.f32 %v3317_v58, %v804_v57 }
  0xf9   : > { %v823_v63 = vmul.f32 %v3319_v61, %v803_v59 }
  0xfa   : > { %v835_v2 = vmul.f32 %v2991_v60, %v824_v62 }
  0xfb   : > { %v3321_v3 = vpop.eup %3320  ;;  %v834_v8 = vmul.f32 %v2991_v60, %v823_v63 }
  0xfc   : > { %v3323_v9 = vpop.eup %3322  ;;  %v846_v10 = vadd.f32 %v2992_v0, %v835_v2  ;;  %v826_v11 = vmul.f32 %v3321_v3, %v806_v1 }
  0xfd   : > { %v845_v5 = vadd.f32 %v2992_v0, %v834_v8  ;;  %v825_v12 = vmul.f32 %v3323_v9, %v805_v7 }
  0xfe   : > { %v837_v13 = vmul.f32 %v2991_v60, %v826_v11 }
  0xff   : > { %v849_v14 = vpack.c.bf16 %v846_v10, %v845_v5  ;;  %v836_v15 = vmul.f32 %v2991_v60, %v825_v12 }
 0x100   : > { %v848_v16 = vadd.f32 %v2992_v0, %v837_v13 }
 0x101   : > { %2997 = vmatmul.mubr.msk.bf16.vlgmr.msra.gmra.mrb[0].mxu0 %vm765_vm1, %v849_v14  ;;  %v847_v17 = vadd.f32 %v2992_v0, %v836_v15 }
 0x103   : > { %v850_v18 = vpack.c.bf16 %v848_v16, %v847_v17 }
 0x105   : > { %2998 = vmatmul.mubr.msk.bf16.vlgmr.msra.gmra.mrb[0].mxu1 %vm765_vm1, %v850_v18 }
 0x1d4   : > { %v3884_v6 = vpop.f32.mrb[0].mxu0 }
 0x1d5   : > { %938 = vrot.lane.b32.xlu0 %v3884_v6, %s3553_s18  ;;  %v917_v4 = vpop.f32.mrb[1].mxu0  ;;  %v1179_v34 = vmul.f32 %v1168_v31, %v3884_v6 }
 0x1d6   : > { %968 = vrot.lane.b32.xlu1 %v917_v4, %s3554_s27  ;;  %v3888_v19 = vpop.f32.mrb[2].mxu0 }
 0x1d7   : > { %v921_v20 = vpop.f32.mrb[3].mxu0  ;;  %v1283_v21 = vpack.c.bf16 %v3888_v19, %v3884_v6  ;;  %v1180_v39 = vmul.f32 %v1170_v35, %v3888_v19 }
 0x1d8   : > { %v3892_v22 = vpop.f32.mrb[0].mxu1 }
 0x1d9   : > { %942 = vrot.lane.b32.xlu0 %v3892_v22, %s3553_s18  ;;  %v927_v23 = vpop.f32.mrb[1].mxu1 }
 0x1da   : > { %976 = vrot.lane.b32.xlu1 %v927_v23, %s3554_s27  ;;  %v3896_v24 = vpop.f32.mrb[2].mxu1 }
 0x1db   : > { %v931_v29 = vpop.f32.mrb[3].mxu1  ;;  %v1284_v30 = vpack.c.bf16 %v3896_v24, %v3892_v22 }
 0x1dd   : > { %950 = vrot.lane.b32.xlu0 %v3884_v6, %s3555_s2 }
 0x1de   : > { %940 = vrot.lane.b32.xlu1 %v3888_v19, %s3553_s18 }
 0x1e1   : > { %954 = vrot.lane.b32.xlu0 %v3892_v22, %s3555_s2 }
 0x1e2   : > { %944 = vrot.lane.b32.xlu1 %v3896_v24, %s3553_s18 }
 0x1e5   : > { %966 = vrot.lane.b32.xlu0 %v3884_v6, %s3554_s27 }
 0x1e6   : > { %952 = vrot.lane.b32.xlu1 %v3888_v19, %s3555_s2 }
 0x1e9   : > { %974 = vrot.lane.b32.xlu0 %v3892_v22, %s3554_s27 }
 0x1ea   : > { %956 = vrot.lane.b32.xlu1 %v3896_v24, %s3555_s2  ;;  %s3560_s2 = smov 120  }
 0x1ed   : > { %970 = vrot.lane.b32.xlu0 %v3888_v19, %s3554_s27 }
 0x1ee   : > { %972 = vrot.lane.b32.xlu1 %v921_v20, %s3554_s27 }
 0x1f1   : > { %978 = vrot.lane.b32.xlu0 %v3896_v24, %s3554_s27 }
 0x1f2   : > { %980 = vrot.lane.b32.xlu1 %v931_v29, %s3554_s27 }
 0x1f5   : > { %1139 = vrot.lane.b32.xlu0 %v3919_v32, %s3554_s27 }
 0x1f6   : > { %1141 = vrot.lane.b32.xlu1 %v3926_v33, %s3554_s27 }
 0x1f9   : > { %1211 = vrot.lane.b32.xlu0 %v1179_v34, %s3556_s25 }
 0x1fa   : > { %1021 = vrot.lane.b32.xlu1 %v3851_v25, %s3557_s26  ;;  %v1181_v25 = vmul.f32 %v1172_v37, %v3892_v22 }
 0x1fd   : > { %1019 = vrot.lane.b32.xlu0 %v3856_v26, %s3557_s26  ;;  %v1174_v26 = vpop.permute.xlu1 %1173 }
 0x1fe   : > { %1145 = vrot.lane.b32.xlu1 %v3939_v36, %s3554_s27  ;;  %v1182_v40 = vmul.f32 %v1174_v26, %v3896_v24 }
 0x201   : > { %1143 = vrot.lane.b32.xlu0 %v3946_v38, %s3554_s27 }
 0x202   : > { %1213 = vrot.lane.b32.xlu1 %v1180_v39, %s3556_s25 }
 0x205   : > { %1215 = vrot.lane.b32.xlu0 %v1181_v25, %s3556_s25 }
 0x206   : > { %1025 = vrot.lane.b32.xlu1 %v3869_v28, %s3557_s26 }
 0x209   : > { %1023 = vrot.lane.b32.xlu0 %v3863_v27, %s3557_s26 }
 0x20a   : > { %1217 = vrot.lane.b32.xlu1 %v1182_v40, %s3556_s25 }
 0x247   : > { %v3960_v41 = vpop.permute.xlu0 %938 }
 0x248   : > { %v969_v42 = vpop.permute.xlu1 %968  ;;  %v1183_v43 = vmul.f32 %v1168_v31, %v3960_v41 }
 0x24a   : > { %1219 = vrot.lane.b32.xlu0 %v1183_v43, %s3556_s25 }
 0x24b   : > { %v3964_v44 = vpop.permute.xlu0 %942 }
 0x24c   : > { %v977_v45 = vpop.permute.xlu1 %976  ;;  %v1185_v46 = vmul.f32 %v1172_v37, %v3964_v44 }
 0x24e   : > { %1223 = vrot.lane.b32.xlu0 %v1185_v46, %s3556_s25 }
 0x24f   : > { %v3968_v28 = vpop.permute.xlu0 %950 }
 0x250   : > { %v3970_v47 = vpop.permute.xlu1 %940  ;;  %v1187_v27 = vmul.f32 %v1168_v31, %v3968_v28 }
 0x251   : > { %v1184_v48 = vmul.f32 %v1170_v35, %v3970_v47 }
 0x252   : > { %1227 = vrot.lane.b32.xlu0 %v1187_v27, %s3556_s25 }
 0x253   : > { %1221 = vrot.lane.b32.xlu1 %v1184_v48, %s3556_s25  ;;  %v3976_v49 = vpop.permute.xlu0 %954 }
 0x254   : > { %v3978_v50 = vpop.permute.xlu1 %944  ;;  %v1189_v51 = vmul.f32 %v1172_v37, %v3976_v49 }
 0x255   : > { %v1186_v52 = vmul.f32 %v1174_v26, %v3978_v50 }
 0x256   : > { %1231 = vrot.lane.b32.xlu0 %v1189_v51, %s3556_s25 }
 0x257   : > { %1225 = vrot.lane.b32.xlu1 %v1186_v52, %s3556_s25  ;;  %v967_v53 = vpop.permute.xlu0 %966 }
 0x258   : > { %v3985_v54 = vsel %vm982_vm2, %v967_v53, %v969_v42  ;;  %v3987_v55 = vpop.permute.xlu1 %952 }
 0x259   : > { %v1188_v56 = vmul.f32 %v1170_v35, %v3987_v55  ;;  %v1191_v57 = vmul.f32 %v1168_v31, %v3985_v54 }
 0x25b   : > { %1229 = vrot.lane.b32.xlu1 %v1188_v56, %s3556_s25  ;;  %1235 = vrot.lane.b32.xlu0 %v1191_v57, %s3556_s25  ;;  %v975_v58 = vpop.permute.xlu0 %974 }
 0x25c   : > { %v3994_v59 = vsel %vm982_vm2, %v975_v58, %v977_v45  ;;  %v3996_v60 = vpop.permute.xlu1 %956 }
 0x25d   : > { %v1190_v61 = vmul.f32 %v1174_v26, %v3996_v60  ;;  %v1193_v62 = vmul.f32 %v1172_v37, %v3994_v59 }
 0x25f   : > { %1233 = vrot.lane.b32.xlu1 %v1190_v61, %s3556_s25  ;;  %1239 = vrot.lane.b32.xlu0 %v1193_v62, %s3556_s25  ;;  %v971_v63 = vpop.permute.xlu0 %970 }
 0x260   : > { %v973_v0 = vpop.permute.xlu1 %972 }
 0x261   : > { %v4003_v1 = vsel %vm982_vm2, %v971_v63, %v973_v0 }
 0x262   : > { %v1192_v2 = vmul.f32 %v1170_v35, %v4003_v1  ;;  %v1289_v3 = vpack.c.bf16 %v4003_v1, %v3985_v54  ;;  %v3558_v35 = vmov 0.0  }
 0x263   : > { %v979_v7 = vpop.permute.xlu0 %978  ;;  %3091 = vmatprep.subr.bf16.mxu1 %v3558_v35  ;;  %3103 = vmatprep.subr.bf16.mxu0 %v3558_v35 }
 0x264   : > { %v981_v8 = vpop.permute.xlu1 %980  ;;  %1237 = vrot.lane.b32.xlu1 %v1192_v2, %s3556_s25  ;;  %3093 = vmatprep.mubr.msk.bf16.mxu1 %vm3559_vm3, %v3558_v35 }
 0x265   : > { %v4010_v9 = vsel %vm982_vm2, %v979_v7, %v981_v8  ;;  %3105 = vmatprep.mubr.msk.bf16.mxu0 %vm3559_vm3, %v3558_v35 }
 0x266   : > { %v1194_v10 = vmul.f32 %v1174_v26, %v4010_v9  ;;  %v1290_v11 = vpack.c.bf16 %v4010_v9, %v3994_v59 }
 0x267   : > { %v4015_v5 = vpop.permute.xlu0 %1139 }
 0x268   : > { %v4017_v12 = vpop.permute.xlu1 %1141  ;;  %1241 = vrot.lane.b32.xlu1 %v1194_v10, %s3556_s25  ;;  %v1151_v4 = vmul.f32 %v4015_v5, %v3884_v6  ;;  %v1155_v2 = vmul.f32 %v4015_v5, %v3960_v41 }
 0x269   : > { %v1152_v23 = vmul.f32 %v4017_v12, %v3888_v19  ;;  %v1156_v7 = vmul.f32 %v4017_v12, %v3970_v47 }
 0x26b   : > { %v1212_v13 = vpop.permute.xlu0 %1211 }
 0x26c   : > { %v4020_v14 = vpop.permute.xlu1 %1021  ;;  %v1259_v31 = vadd.f32 %v1212_v13, %v1151_v4 }
 0x26d   : > { %v1032_v15 = vmul.f32 %v4020_v14, %v3888_v19  ;;  %v1036_v53 = vmul.f32 %v4020_v14, %v3970_v47  ;;  %v1040_v62 = vmul.f32 %v4020_v14, %v3987_v55 }
 0x26f   : > { %1065 = vrot.lane.b32.xlu0 %v1032_v15, %s3556_s25  ;;  %v4025_v16 = vpop.permute.xlu0 %1019 }
 0x270   : > { %v4027_v17 = vpop.permute.xlu1 %1145  ;;  %v1031_v18 = vmul.f32 %v4025_v16, %v3884_v6  ;;  %v1035_v58 = vmul.f32 %v4025_v16, %v3960_v41 }
 0x271   : > { %v1154_v45 = vmul.f32 %v4027_v17, %v3896_v24 }
 0x272   : > { %1063 = vrot.lane.b32.xlu1 %v1031_v18, %s3556_s25 }
 0x273   : > { %v4034_v20 = vpop.permute.xlu0 %1143 }
 0x274   : > { %v1214_v29 = vpop.permute.xlu1 %1213  ;;  %v1153_v42 = vmul.f32 %v4034_v20, %v3892_v22  ;;  %v1157_v18 = vmul.f32 %v4034_v20, %v3964_v44 }
 0x275   : > { %v1260_v34 = vadd.f32 %v1214_v29, %v1152_v23  ;;  %v1158_v23 = vmul.f32 %v4027_v17, %v3978_v50 }
 0x277   : > { %v1275_v37 = vpack.c.bf16 %v1260_v34, %v1259_v31  ;;  %v1216_v39 = vpop.permute.xlu0 %1215 }
 0x278   : > { %v1026_v25 = vpop.permute.xlu1 %1025  ;;  %v1261_v51 = vadd.f32 %v1216_v39, %v1153_v42  ;;  %v1160_v42 = vmul.f32 %v4017_v12, %v3987_v55 }
 0x279   : > { %v1034_v26 = vmul.f32 %v1026_v25, %v3896_v24  ;;  %v4042_v40 = vmul.f32 %v1026_v25, %v4010_v9  ;;  %v1038_v57 = vmul.f32 %v1026_v25, %v3978_v50 }
 0x27b   : > { %1069 = vrot.lane.b32.xlu1 %v1034_v26, %s3556_s25  ;;  %v1024_v43 = vpop.permute.xlu0 %1023 }
 0x27c   : > { %v1218_v46 = vpop.permute.xlu1 %1217  ;;  %v1033_v27 = vmul.f32 %v1024_v43, %v3892_v22  ;;  %v4051_v48 = vmul.f32 %v1024_v43, %v3994_v59  ;;  %v1037_v61 = vmul.f32 %v1024_v43, %v3964_v44 }
 0x27d   : > { %v1262_v52 = vadd.f32 %v1218_v46, %v1154_v45  ;;  %v1039_v45 = vmul.f32 %v4025_v16, %v3968_v28 }
 0x27e   : > { %1067 = vrot.lane.b32.xlu0 %v1033_v27, %s3556_s25 }
 0x27f   : > { %v1276_v56 = vpack.c.bf16 %v1262_v52, %v1261_v51  ;;  %1073 = vrot.lane.b32.xlu1 %v1036_v53, %s3556_s25  ;;  %v1161_v52 = vmul.f32 %v4034_v20, %v3976_v49 }
 0x282   : > { %1292 = vrot.lane.b32.xlu0 %v1275_v37, %s3560_s2  ;;  %v1159_v37 = vmul.f32 %v4015_v5, %v3968_v28 }
 0x283   : > { %1077 = vrot.lane.b32.xlu1 %v1038_v57, %s3556_s25  ;;  %v1042_v57 = vmul.f32 %v1026_v25, %v3996_v60 }
 0x286   : > { %1071 = vrot.lane.b32.xlu0 %v1035_v58, %s3556_s25 }
 0x287   : > { %1342 = vrot.lane.b32.xlu1 %v1276_v56, %s3560_s2  ;;  %v1162_v56 = vmul.f32 %v4027_v17, %v3996_v60 }
 0x28a   : > { %1075 = vrot.lane.b32.xlu0 %v1037_v61, %s3556_s25 }
 0x28b   : > { %1081 = vrot.lane.b32.xlu1 %v1040_v62, %s3556_s25 }
 0x2bc   : > { %v1220_v63 = vpop.permute.xlu0 %1219 }
 0x2bd   : > { %v1263_v10 = vadd.f32 %v1220_v63, %v1155_v2  ;;  %v1041_v2 = vmul.f32 %v1024_v43, %v3976_v49  ;;  %v1165_v43 = vmul.f32 %v4034_v20, %v3994_v59  ;;  %v1000_v20 = vmul.f32 %v3926_v33, %v3888_v19 }
 0x2c0   : > { %v1224_v0 = vpop.permute.xlu0 %1223 }
 0x2c1   : > { %v1265_v31 = vadd.f32 %v1224_v0, %v1157_v18  ;;  %v1044_v18 = vmul.f32 %v4020_v14, %v4003_v1 }
 0x2c4   : > { %v1228_v13 = vpop.permute.xlu0 %1227 }
 0x2c5   : > { %v1222_v8 = vpop.permute.xlu1 %1221  ;;  %v1267_v27 = vadd.f32 %v1228_v13, %v1159_v37 }
 0x2c6   : > { %v1264_v15 = vadd.f32 %v1222_v8, %v1156_v7  ;;  %v1163_v7 = vmul.f32 %v4015_v5, %v3985_v54  ;;  %v1164_v8 = vmul.f32 %v4017_v12, %v4003_v1  ;;  %v1166_v5 = vmul.f32 %v4027_v17, %v4010_v9 }
 0x2c7   : > { %v999_v17 = vmul.f32 %v3919_v32, %v3884_v6 }
 0x2c8   : > { %v1277_v4 = vpack.c.bf16 %v1264_v15, %v1263_v10  ;;  %v1232_v39 = vpop.permute.xlu0 %1231 }
 0x2c9   : > { %v1226_v29 = vpop.permute.xlu1 %1225  ;;  %v1269_v61 = vadd.f32 %v1232_v39, %v1161_v52 }
 0x2ca   : > { %v1266_v34 = vadd.f32 %v1226_v29, %v1158_v23  ;;  %1392 = vrot.lane.b32.xlu0 %v1277_v4, %s3560_s2 }
 0x2cc   : > { %v1278_v26 = vpack.c.bf16 %v1266_v34, %v1265_v31  ;;  %v1043_v34 = vmul.f32 %v4025_v16, %v3985_v54 }
 0x2cd   : > { %v1230_v46 = vpop.permute.xlu1 %1229  ;;  %v1236_v62 = vpop.permute.xlu0 %1235 }
 0x2ce   : > { %v1268_v51 = vadd.f32 %v1230_v46, %v1160_v42  ;;  %1079 = vrot.lane.b32.xlu0 %v1039_v45, %s3556_s25  ;;  %1442 = vrot.lane.b32.xlu1 %v1278_v26, %s3560_s2  ;;  %v1271_v25 = vadd.f32 %v1236_v62, %v1163_v7  ;;  %v1002_v45 = vmul.f32 %v3939_v36, %v3896_v24 }
 0x2cf   : > { %v1001_v46 = vmul.f32 %v3946_v38, %v3892_v22  ;;  %v1003_v7 = vmul.f32 %v3919_v32, %v3960_v41 }
 0x2d0   : > { %v1279_v53 = vpack.c.bf16 %v1268_v51, %v1267_v27 }
 0x2d1   : > { %v1234_v58 = vpop.permute.xlu1 %1233  ;;  %v1240_v15 = vpop.permute.xlu0 %1239 }
 0x2d2   : > { %v1270_v63 = vadd.f32 %v1234_v58, %v1162_v56  ;;  %1085 = vrot.lane.b32.xlu1 %v1042_v57, %s3556_s25  ;;  %1492 = vrot.lane.b32.xlu0 %v1279_v53, %s3560_s2  ;;  %v1273_v12 = vadd.f32 %v1240_v15, %v1165_v43  ;;  %v1005_v43 = vmul.f32 %v3946_v38, %v3964_v44 }
 0x2d4   : > { %v1280_v0 = vpack.c.bf16 %v1270_v63, %v1269_v61 }
 0x2d6   : > { %v1238_v10 = vpop.permute.xlu1 %1237  ;;  %1083 = vrot.lane.b32.xlu0 %v1041_v2, %s3556_s25  ;;  %1542 = vrot.lane.b32.xlu1 %v1280_v0, %s3560_s2 }
 0x2d7   : > { %v1272_v13 = vadd.f32 %v1238_v10, %v1164_v8  ;;  %v1004_v10 = vmul.f32 %v3926_v33, %v3970_v47 }
 0x2d9   : > { %v1281_v4 = vpack.c.bf16 %v1272_v13, %v1271_v25 }
 0x2da   : > { %v1242_v23 = vpop.permute.xlu1 %1241  ;;  %1089 = vrot.lane.b32.xlu1 %v1044_v18, %s3556_s25 }
 0x2db   : > { %v1274_v29 = vadd.f32 %v1242_v23, %v1166_v5  ;;  %1592 = vrot.lane.b32.xlu0 %v1281_v4, %s3560_s2  ;;  %v1006_v5 = vmul.f32 %v3939_v36, %v3978_v50 }
 0x2dd   : > { %v1282_v31 = vpack.c.bf16 %v1274_v29, %v1273_v12 }
 0x2df   : > { %1087 = vrot.lane.b32.xlu0 %v1043_v34, %s3556_s25  ;;  %1642 = vrot.lane.b32.xlu1 %v1282_v31, %s3560_s2 }
 0x2e1   : > { %v1066_v14 = vpop.permute.xlu0 %1065 }
 0x2e2   : > { %v1112_v39 = vadd.f32 %v1066_v14, %v1000_v20  ;;  %v1007_v14 = vmul.f32 %v3919_v32, %v3968_v28 }
 0x2e3   : > { %1091 = vrot.lane.b32.xlu0 %v4051_v48, %s3556_s25  ;;  %1093 = vrot.lane.b32.xlu1 %v4042_v40, %s3556_s25  ;;  %s4719_s25 = scalar_lea.vmem %s4673_s8, %s3755_s24 }
 0x2e4   : > { %v1064_v37 = vpop.permute.xlu1 %1063 }
 0x2e5   : > { %v1111_v16 = vadd.f32 %v1064_v37, %v999_v17  ;;  %v1008_v37 = vmul.f32 %v3926_v33, %v3987_v55 }
 0x2e7   : > { %v1127_v26 = vpack.c.bf16 %v1112_v39, %v1111_v16 }
 0x2ed   : > { %v1070_v42 = vpop.permute.xlu1 %1069 }
 0x2ee   : > { %v1114_v51 = vadd.f32 %v1070_v42, %v1002_v45 }
 0x2f0   : > { %v1068_v27 = vpop.permute.xlu0 %1067 }
 0x2f1   : > { %v1113_v48 = vadd.f32 %v1068_v27, %v1001_v46  ;;  %v1074_v52 = vpop.permute.xlu1 %1073  ;;  %v1009_v46 = vmul.f32 %v3946_v38, %v3976_v49 }
 0x2f2   : > { %v1116_v18 = vadd.f32 %v1074_v52, %v1004_v10 }
 0x2f3   : > { %v1128_v53 = vpack.c.bf16 %v1114_v51, %v1113_v48  ;;  %v1010_v51 = vmul.f32 %v3939_v36, %v3996_v60 }
 0x2f4   : > { %v1293_v40 = vpop.permute.xlu0 %1292 }
 0x2f5   : > { %v1298_v56 = vsel %vm982_vm2, %v1293_v40, 0  ;;  %v1078_v57 = vpop.permute.xlu1 %1077 }
 0x2f6   : > { %3092 = vmatpush3.bf16.xpose.msra.mxu1 %v1298_v56  ;;  %v1118_v34 = vadd.f32 %v1078_v57, %v1006_v5 }
 0x2f7   : > { %3097 = vmatprep.subr.bf16.mxu1 %v3558_v35 }
 0x2f8   : > { %v1072_v62 = vpop.permute.xlu0 %1071 }
 0x2f9   : > { %v1343_v58 = vpop.permute.xlu1 %1342  ;;  %v1115_v25 = vadd.f32 %v1072_v62, %v1003_v7 }
 0x2fa   : > { %v1348_v61 = vsel %vm982_vm2, %v1343_v58, 0  ;;  %v1012_v58 = vmul.f32 %v3926_v33, %v4003_v1  ;;  %v1014_v33 = vmul.f32 %v3939_v36, %v4010_v9 }
 0x2fb   : > { %v1129_v23 = vpack.c.bf16 %v1116_v18, %v1115_v25 }
 0x2fc   : > { %v1076_v63 = vpop.permute.xlu0 %1075 }
 0x2fd   : > { %3094 = vmatmul.mubr.msk.bf16.vlgmr.msra.gmra.mrb[4].mxu1 %vm982_vm2, %v1127_v26  ;;  %v1082_v0 = vpop.permute.xlu1 %1081  ;;  %v1117_v12 = vadd.f32 %v1076_v63, %v1005_v43 }
 0x2fe   : > { %3098 = vmatpush3.bf16.xpose.msra.mxu1 %v1348_v61  ;;  %3099 = vmatprep.mubr.msk.bf16.mxu1 %vm3559_vm3, %v3558_v35  ;;  %v1120_v42 = vadd.f32 %v1082_v0, %v1008_v37  ;;  %v1011_v61 = vmul.f32 %v3919_v32, %v3985_v54  ;;  %v1013_v32 = vmul.f32 %v3946_v38, %v3994_v59 }
 0x2ff   : > { %3109 = vmatprep.subr.bf16.mxu1 %v3558_v35  ;;  %v1130_v17 = vpack.c.bf16 %v1118_v34, %v1117_v12 }
 0x305   : > { %3100 = vmatmul.mubr.msk.bf16.vlgmr.msra.gmra.mrb[8].mxu1 %vm982_vm2, %v1128_v53 }
 0x306   : > { %3111 = vmatprep.mubr.msk.bf16.mxu1 %vm3559_vm3, %v3558_v35 }
 0x33c   : > { %v1393_v2 = vpop.permute.xlu0 %1392 }
 0x33d   : > { %v1398_v8 = vsel %vm982_vm2, %v1393_v2, 0 }
 0x33e   : > { %3104 = vmatpush3.bf16.xpose.msra.mxu0 %v1398_v8 }
 0x33f   : > { %3115 = vmatprep.subr.bf16.mxu0 %v3558_v35 }
 0x340   : > { %v1443_v13 = vpop.permute.xlu1 %1442  ;;  %v1080_v15 = vpop.permute.xlu0 %1079 }
 0x341   : > { %v1448_v4 = vsel %vm982_vm2, %v1443_v13, 0  ;;  %v1119_v39 = vadd.f32 %v1080_v15, %v1007_v14 }
 0x342   : > { %3110 = vmatpush3.bf16.xpose.msra.mxu1 %v1448_v4 }
 0x343   : > { %3121 = vmatprep.subr.bf16.mxu1 %v3558_v35  ;;  %v1131_v27 = vpack.c.bf16 %v1120_v42, %v1119_v39 }
 0x344   : > { %v1086_v29 = vpop.permute.xlu1 %1085  ;;  %v1493_v31 = vpop.permute.xlu0 %1492 }
 0x345   : > { %v1498_v20 = vsel %vm982_vm2, %v1493_v31, 0  ;;  %3106 = vmatmul.mubr.msk.bf16.vlgmr.msra.gmra.mrb[4].mxu0 %vm982_vm2, %v1129_v23  ;;  %v1122_v53 = vadd.f32 %v1086_v29, %v1010_v51 }
 0x346   : > { %3116 = vmatpush3.bf16.xpose.msra.mxu0 %v1498_v20  ;;  %3117 = vmatprep.mubr.msk.bf16.mxu0 %vm3559_vm3, %v3558_v35 }
 0x347   : > { %3127 = vmatprep.subr.bf16.mxu0 %v3558_v35 }
 0x348   : > { %v1543_v16 = vpop.permute.xlu1 %1542  ;;  %v1084_v26 = vpop.permute.xlu0 %1083 }
 0x349   : > { %v1548_v45 = vsel %vm982_vm2, %v1543_v16, 0  ;;  %3112 = vmatmul.mubr.msk.bf16.vlgmr.msra.gmra.mrb[12].mxu1 %vm982_vm2, %v1130_v17  ;;  %v1121_v48 = vadd.f32 %v1084_v26, %v1009_v46 }
 0x34a   : > { %3122 = vmatpush3.bf16.xpose.msra.mxu1 %v1548_v45  ;;  %3123 = vmatprep.mubr.msk.bf16.mxu1 %vm3559_vm3, %v3558_v35 }
 0x34b   : > { %3133 = vmatprep.subr.bf16.mxu1 %v3558_v35  ;;  %v1132_v57 = vpack.c.bf16 %v1122_v53, %v1121_v48 }
 0x34c   : > { %v1090_v52 = vpop.permute.xlu1 %1089 }
 0x34d   : > { %3118 = vmatmul.mubr.msk.bf16.vlgmr.msra.gmra.mrb[8].mxu0 %vm982_vm2, %v1131_v27  ;;  %v1593_v40 = vpop.permute.xlu0 %1592  ;;  %v1124_v0 = vadd.f32 %v1090_v52, %v1012_v58 }
 0x34e   : > { %v1598_v56 = vsel %vm982_vm2, %v1593_v40, 0  ;;  %3129 = vmatprep.mubr.msk.bf16.mxu0 %vm3559_vm3, %v3558_v35 }
 0x34f   : > { %3128 = vmatpush3.bf16.xpose.msra.mxu0 %v1598_v56 }
 0x350   : > { %3139 = vmatprep.subr.bf16.mxu0 %v3558_v35 }
 0x351   : > { %v1643_v62 = vpop.permute.xlu1 %1642  ;;  %3124 = vmatmul.mubr.msk.bf16.vlgmr.msra.gmra.mrb[16].mxu1 %vm982_vm2, %v1132_v57  ;;  %v1088_v63 = vpop.permute.xlu0 %1087 }
 0x352   : > { %v1648_v2 = vsel %vm982_vm2, %v1643_v62, 0  ;;  %v1123_v7 = vadd.f32 %v1088_v63, %v1011_v61  ;;  %3135 = vmatprep.mubr.msk.bf16.mxu1 %vm3559_vm3, %v3558_v35 }
 0x353   : > { %3134 = vmatpush3.bf16.xpose.msra.mxu1 %v1648_v2 }
 0x354   : > { %v1133_v8 = vpack.c.bf16 %v1124_v0, %v1123_v7  ;;  %3145 = vmatprep.subr.bf16.mxu1 %v3558_v35 }
 0x355   : > { %v1094_v10 = vpop.permute.xlu1 %1093  ;;  %v1092_v25 = vpop.permute.xlu0 %1091 }
 0x356   : > { %v1126_v13 = vadd.f32 %v1094_v10, %v1014_v33  ;;  %v1125_v15 = vadd.f32 %v1092_v25, %v1013_v32  ;;  %3130 = vmatmul.mubr.msk.bf16.vlgmr.msra.gmra.mrb[12].mxu0 %vm982_vm2, %v1133_v8 }
 0x357   : > { %3141 = vmatprep.mubr.msk.bf16.mxu0 %vm3559_vm3, %v3558_v35 }
 0x358   : > { %v1134_v18 = vpack.c.bf16 %v1126_v13, %v1125_v15 }
 0x35a   : > { %3136 = vmatmul.mubr.msk.bf16.vlgmr.msra.gmra.mrb[20].mxu1 %vm982_vm2, %v1134_v18 }
 0x35b   : > { %3147 = vmatprep.mubr.msk.bf16.mxu1 %vm3559_vm3, %v3558_v35 }
 0x3d0   : > { %v4192_v36 = vpop.f32.mrb[4].mxu1 }
 0x3d1   : > { %v3095_v38 = vpop.f32.mrb[5].mxu1  ;;  %v1692_v43 = vsel %vm1691_vm4, %v4192_v36, -inf }
 0x3d2   : > { %1693 = vmax.xlane.f32.xlu0 %v1692_v43  ;;  %v4196_v4 = vpop.f32.mrb[6].mxu1 }
 0x3d3   : > { %v3096_v5 = vpop.f32.mrb[7].mxu1  ;;  %v1695_v23 = vsel %vm1691_vm4, %v4196_v4, -inf }
 0x3d4   : > { %1696 = vmax.xlane.f32.xlu1 %v1695_v23  ;;  %v1285_v23 = vpack.c.bf16 %v3970_v47, %v3960_v41 }
 0x3d8   : > { %v4200_v12 = vpop.f32.mrb[8].mxu1 }
 0x3d9   : > { %v3101_v29 = vpop.f32.mrb[9].mxu1  ;;  %v1698_v31 = vsel %vm1691_vm4, %v4200_v12, -inf }
 0x3da   : > { %1699 = vmax.xlane.f32.xlu0 %v1698_v31  ;;  %v4204_v34 = vpop.f32.mrb[10].mxu1  ;;  %v1286_v29 = vpack.c.bf16 %v3978_v50, %v3964_v44  ;;  %v1287_v31 = vpack.c.bf16 %v3987_v55, %v3968_v28 }
 0x3db   : > { %v3102_v14 = vpop.f32.mrb[11].mxu1  ;;  %v1701_v20 = vsel %vm1691_vm4, %v4204_v34, -inf }
 0x3de   : > { %1702 = vmax.xlane.f32.xlu0 %v1701_v20 }
 0x418   : > { %v4208_v17 = vpop.f32.mrb[4].mxu0 }
 0x419   : > { %v3107_v37 = vpop.f32.mrb[5].mxu0  ;;  %v1704_v39 = vsel %vm1691_vm4, %v4208_v17, -inf }
 0x41a   : > { %1705 = vmax.xlane.f32.xlu0 %v1704_v39  ;;  %v4212_v16 = vpop.f32.mrb[6].mxu0 }
 0x41b   : > { %v3108_v26 = vpop.f32.mrb[7].mxu0  ;;  %v1707_v42 = vsel %vm1691_vm4, %v4212_v16, -inf }
 0x41c   : > { %v4216_v45 = vpop.f32.mrb[12].mxu1  ;;  %1708 = vmax.xlane.f32.xlu1 %v1707_v42 }
 0x41d   : > { %v3113_v46 = vpop.f32.mrb[13].mxu1  ;;  %v1710_v27 = vsel %vm1691_vm4, %v4216_v45, -inf }
 0x41e   : > { %v4220_v51 = vpop.f32.mrb[14].mxu1  ;;  %1711 = vmax.xlane.f32.xlu0 %v1710_v27 }
 0x41f   : > { %v3114_v48 = vpop.f32.mrb[15].mxu1  ;;  %v1713_v52 = vsel %vm1691_vm4, %v4220_v51, -inf }
 0x420   : > { %1714 = vmax.xlane.f32.xlu1 %v1713_v52  ;;  %v4224_v53 = vpop.f32.mrb[8].mxu0 }
 0x421   : > { %v3119_v40 = vpop.f32.mrb[9].mxu0  ;;  %v1716_v56 = vsel %vm1691_vm4, %v4224_v53, -inf }
 0x422   : > { %1717 = vmax.xlane.f32.xlu0 %v1716_v56  ;;  %v4228_v57 = vpop.f32.mrb[10].mxu0 }
 0x423   : > { %v3120_v58 = vpop.f32.mrb[11].mxu0  ;;  %v1719_v61 = vsel %vm1691_vm4, %v4228_v57, -inf }
 0x424   : > { %1720 = vmax.xlane.f32.xlu1 %v1719_v61  ;;  %v4232_v62 = vpop.f32.mrb[16].mxu1 }
 0x425   : > { %v3125_v63 = vpop.f32.mrb[17].mxu1  ;;  %v1722_v0 = vsel %vm1691_vm4, %v4232_v62, -inf }
 0x426   : > { %1723 = vmax.xlane.f32.xlu0 %v1722_v0  ;;  %v4236_v2 = vpop.f32.mrb[18].mxu1 }
 0x427   : > { %v3126_v7 = vpop.f32.mrb[19].mxu1  ;;  %v1725_v8 = vsel %vm1691_vm4, %v4236_v2, -inf }
 0x428   : > { %1726 = vmax.xlane.f32.xlu1 %v1725_v8 }
 0x429   : > { %v4240_v33 = vpop.f32.mrb[12].mxu0 }
 0x42a   : > { %v3131_v32 = vpop.f32.mrb[13].mxu0  ;;  %v1728_v10 = vsel %vm1691_vm4, %v4240_v33, -inf }
 0x42b   : > { %1729 = vmax.xlane.f32.xlu0 %v1728_v10  ;;  %v4244_v25 = vpop.f32.mrb[14].mxu0 }
 0x42c   : > { %v3132_v13 = vpop.f32.mrb[15].mxu0  ;;  %v1731_v41 = vsel %vm1691_vm4, %v4244_v25, -inf }
 0x42d   : > { %v4246_v15 = vpop.f32.mrb[20].mxu1 }
 0x42e   : > { %v3137_v18 = vpop.f32.mrb[21].mxu1  ;;  %v1734_v38 = vsel %vm1691_vm4, %v4246_v15, -inf }
 0x42f   : > { %1735 = vmax.xlane.f32.xlu0 %v1734_v38  ;;  %v4250_v43 = vpop.f32.mrb[22].mxu1 }
 0x430   : > { %v3138_v5 = vpop.f32.mrb[23].mxu1  ;;  %v1737_v6 = vsel %vm1691_vm4, %v4250_v43, -inf }
 0x439   : > { %1925 = vrot.lane.b32.xlu1 %v1284_v30, %s3561_s20 }
 0x43d   : > { %1973 = vrot.lane.b32.xlu1 %v1285_v23, %s3561_s20 }
 0x441   : > { %2021 = vrot.lane.b32.xlu1 %v1286_v29, %s3561_s20 }
 0x445   : > { %1877 = vrot.lane.b32.xlu0 %v1283_v21, %s3561_s20 }
 0x449   : > { %2069 = vrot.lane.b32.xlu0 %v1287_v31, %s3561_s20 }
 0x45f   : > { %v1694_v22 = vpop.xlane.xlu0 %1693 }
 0x460   : > { %v1740_v24 = vsub.f32 %v4192_v36, %v1694_v22  ;;  %v1288_v36 = vpack.c.bf16 %v3996_v60, %v3976_v49 }
 0x462   : > { %v1756_v30 = vmul.f32 1.442695, %v1740_v24 }
 0x464   : > { %3324 = vpow2.f32 %v1756_v30 }
 0x465   : > { %1732 = vmax.xlane.f32.xlu1 %v1731_v41 }
 0x467   : > { %v1700_v44 = vpop.xlane.xlu0 %1699 }
 0x468   : > { %v1742_v47 = vsub.f32 %v4200_v12, %v1700_v44  ;;  %v1697_v12 = vpop.xlane.xlu1 %1696 }
 0x469   : > { %1738 = vmax.xlane.f32.xlu1 %v1737_v6  ;;  %v1741_v14 = vsub.f32 %v4196_v4, %v1697_v12 }
 0x46a   : > { %v1760_v19 = vmul.f32 1.442695, %v1742_v47 }
 0x46b   : > { %v1703_v20 = vpop.xlane.xlu0 %1702  ;;  %v1758_v37 = vmul.f32 1.442695, %v1741_v14 }
 0x46c   : > { %3326 = vpow2.f32 %v1760_v19  ;;  %v1743_v39 = vsub.f32 %v4204_v34, %v1703_v20 }
 0x46d   : > { %3328 = vpow2.f32 %v1758_v37 }
 0x46e   : > { %v4275_v21 = vpop.eup %3324  ;;  %v1762_v26 = vmul.f32 1.442695, %v1743_v39 }
 0x46f   : > { %v1788_v28 = vsel %vm1691_vm4, %v4275_v21, 0.0 }
 0x470   : > { %1789 = vadd.xlane.f32.xlu0 %v1788_v28  ;;  %3330 = vpow2.f32 %v1762_v26 }
 0x476   : > { %v4279_v50 = vpop.eup %3326 }
 0x477   : > { %v1794_v55 = vsel %vm1691_vm4, %v4279_v50, 0.0  ;;  %v4288_v42 = vpop.eup %3328 }
 0x478   : > { %1795 = vadd.xlane.f32.xlu0 %v1794_v55  ;;  %v1791_v46 = vsel %vm1691_vm4, %v4288_v42, 0.0 }
 0x47a   : > { %2117 = vrot.lane.b32.xlu1 %v1288_v36, %s3561_s20  ;;  %v4292_v27 = vpop.eup %3330 }
 0x47b   : > { %v1797_v49 = vsel %vm1691_vm4, %v4292_v27, 0.0 }
 0x49e   : > { %1792 = vadd.xlane.f32.xlu1 %v1791_v46 }
 0x4a2   : > { %1798 = vadd.xlane.f32.xlu1 %v1797_v49 }
 0x4a7   : > { %v1706_v60 = vpop.xlane.xlu0 %1705 }
 0x4a8   : > { %v1744_v4 = vsub.f32 %v4208_v17, %v1706_v60 }
 0x4a9   : > { %v1709_v48 = vpop.xlane.xlu1 %1708 }
 0x4aa   : > { %v1764_v34 = vmul.f32 1.442695, %v1744_v4  ;;  %v1745_v52 = vsub.f32 %v4212_v16, %v1709_v48 }
 0x4ab   : > { %v1712_v40 = vpop.xlane.xlu0 %1711 }
 0x4ac   : > { %3332 = vpow2.f32 %v1764_v34  ;;  %v1766_v56 = vmul.f32 1.442695, %v1745_v52  ;;  %v1746_v58 = vsub.f32 %v4216_v45, %v1712_v40 }
 0x4ad   : > { %v1715_v61 = vpop.xlane.xlu1 %1714 }
 0x4ae   : > { %3334 = vpow2.f32 %v1766_v56  ;;  %v1768_v63 = vmul.f32 1.442695, %v1746_v58  ;;  %v1747_v0 = vsub.f32 %v4220_v51, %v1715_v61 }
 0x4af   : > { %v1718_v7 = vpop.xlane.xlu0 %1717 }
 0x4b0   : > { %3336 = vpow2.f32 %v1768_v63  ;;  %v1770_v8 = vmul.f32 1.442695, %v1747_v0  ;;  %v1748_v32 = vsub.f32 %v4224_v53, %v1718_v7 }
 0x4b1   : > { %v1721_v17 = vpop.xlane.xlu1 %1720 }
 0x4b2   : > { %3338 = vpow2.f32 %v1770_v8  ;;  %v1772_v10 = vmul.f32 1.442695, %v1748_v32  ;;  %v1749_v16 = vsub.f32 %v4228_v57, %v1721_v17 }
 0x4b3   : > { %v1724_v13 = vpop.xlane.xlu0 %1723 }
 0x4b4   : > { %3340 = vpow2.f32 %v1772_v10  ;;  %v1774_v18 = vmul.f32 1.442695, %v1749_v16  ;;  %v1750_v45 = vsub.f32 %v4232_v62, %v1724_v13 }
 0x4b5   : > { %v1727_v38 = vpop.xlane.xlu1 %1726 }
 0x4b6   : > { %v4303_v5 = vpop.eup %3332  ;;  %3342 = vpow2.f32 %v1774_v18  ;;  %v1776_v51 = vmul.f32 1.442695, %v1750_v45  ;;  %v1751_v23 = vsub.f32 %v4236_v2, %v1727_v38 }
 0x4b7   : > { %v1800_v53 = vsel %vm1691_vm4, %v4303_v5, 0.0 }
 0x4b8   : > { %v4308_v29 = vpop.eup %3334  ;;  %3344 = vpow2.f32 %v1776_v51  ;;  %v1778_v31 = vmul.f32 1.442695, %v1751_v23  ;;  %1801 = vadd.xlane.f32.xlu0 %v1800_v53  ;;  %v1730_v57 = vpop.xlane.xlu0 %1729 }
 0x4b9   : > { %v1752_v22 = vsub.f32 %v4240_v33, %v1730_v57  ;;  %v1926_v24 = vpop.permute.xlu1 %1925  ;;  %v1803_v62 = vsel %vm1691_vm4, %v4308_v29, 0.0 }
 0x4ba   : > { %v4313_v30 = vpop.eup %3336  ;;  %3346 = vpow2.f32 %v1778_v31  ;;  %3146 = vmatpush3.bf16.msra.mxu1 %v1926_v24  ;;  %1804 = vadd.xlane.f32.xlu1 %v1803_v62 }
 0x4bb   : > { %v1780_v2 = vmul.f32 1.442695, %v1752_v22  ;;  %v1806_v41 = vsel %vm1691_vm4, %v4313_v30, 0.0  ;;  %3157 = vmatprep.subr.bf16.mxu1 %v3558_v35 }
 0x4bc   : > { %v4318_v44 = vpop.eup %3338  ;;  %1807 = vadd.xlane.f32.xlu0 %v1806_v41  ;;  %v1736_v47 = vpop.xlane.xlu0 %1735 }
 0x4bd   : > { %3348 = vpow2.f32 %v1780_v2  ;;  %v1754_v33 = vsub.f32 %v4246_v15, %v1736_v47  ;;  %v1809_v6 = vsel %vm1691_vm4, %v4318_v44, 0.0  ;;  %v1974_v4 = vpop.permute.xlu1 %1973 }
 0x4be   : > { %v4323_v19 = vpop.eup %3340  ;;  %1810 = vadd.xlane.f32.xlu1 %v1809_v6 }
 0x4bf   : > { %v1784_v28 = vmul.f32 1.442695, %v1754_v33  ;;  %v1812_v55 = vsel %vm1691_vm4, %v4323_v19, 0.0 }
 0x4c0   : > { %v4327_v36 = vpop.eup %3342  ;;  %1813 = vadd.xlane.f32.xlu0 %v1812_v55  ;;  %v1878_v12 = vpop.permute.xlu0 %1877 }
 0x4c1   : > { %3350 = vpow2.f32 %v1784_v28  ;;  %3140 = vmatpush3.bf16.msra.mxu0 %v1878_v12  ;;  %v1815_v14 = vsel %vm1691_vm4, %v4327_v36, 0.0  ;;  %v2022_v48 = vpop.permute.xlu1 %2021 }
 0x4c2   : > { %v4331_v15 = vpop.eup %3344  ;;  %1816 = vadd.xlane.f32.xlu1 %v1815_v14  ;;  %3151 = vmatprep.subr.bf16.mxu0 %v3558_v35 }
 0x4c3   : > { %v1818_v20 = vsel %vm1691_vm4, %v4331_v15, 0.0 }
 0x4c4   : > { %v4336_v37 = vpop.eup %3346  ;;  %1819 = vadd.xlane.f32.xlu0 %v1818_v20 }
 0x4c5   : > { %v1821_v39 = vsel %vm1691_vm4, %v4336_v37, 0.0 }
 0x4c6   : > { %1822 = vadd.xlane.f32.xlu1 %v1821_v39 }
 0x4c7   : > { %v4340_v26 = vpop.eup %3348 }
 0x4c8   : > { %v1824_v46 = vsel %vm1691_vm4, %v4340_v26, 0.0 }
 0x4c9   : > { %1825 = vadd.xlane.f32.xlu0 %v1824_v46 }
 0x4cb   : > { %v4344_v49 = vpop.eup %3350 }
 0x4cc   : > { %v1830_v60 = vsel %vm1691_vm4, %v4344_v49, 0.0 }
 0x4cd   : > { %1831 = vadd.xlane.f32.xlu0 %v1830_v60 }
 0x4e3   : > { %2165 = vrot.lane.b32.xlu0 %v1289_v3, %s3561_s20  ;;  %v2070_v3 = vpop.permute.xlu0 %2069 }
 0x4f2   : > { %v1733_v34 = vpop.xlane.xlu1 %1732 }
 0x4f3   : > { %v1753_v52 = vsub.f32 %v4244_v25, %v1733_v34 }
 0x4f5   : > { %v1782_v40 = vmul.f32 1.442695, %v1753_v52 }
 0x4f6   : > { %v1739_v56 = vpop.xlane.xlu1 %1738 }
 0x4f7   : > { %3352 = vpow2.f32 %v1782_v40  ;;  %v1755_v58 = vsub.f32 %v4250_v43, %v1739_v56 }
 0x4f9   : > { %v1786_v61 = vmul.f32 1.442695, %v1755_v58 }
 0x4fa   : > { %v4366_v25 = vpop.permute.xlu1 %2117 }
 0x4fb   : > { %3354 = vpow2.f32 %v1786_v61 }
 0x4fd   : > { %v1790_v43 = vpop.xlane.xlu0 %1789 }
 0x4fe   : > { %3356 = vrcp.f32 %v1790_v43 }
 0x501   : > { %v4354_v63 = vpop.eup %3352 }
 0x502   : > { %v1827_v0 = vsel %vm1691_vm4, %v4354_v63, 0.0 }
 0x503   : > { %1828 = vadd.xlane.f32.xlu1 %v1827_v0 }
 0x505   : > { %v4358_v54 = vpop.eup %3354  ;;  %v1796_v7 = vpop.xlane.xlu0 %1795 }
 0x506   : > { %v1833_v1 = vsel %vm1691_vm4, %v4358_v54, 0.0 }
 0x507   : > { %1834 = vadd.xlane.f32.xlu1 %v1833_v1 }
 0x508   : > { %v3357_v17 = vpop.eup %3356 }
 0x509   : > { %v4369_v16 = vmul.f32 %v3357_v17, %v4275_v21 }
 0x50b   : > { %2712 = vst.msk [vmem:[#allocation7] sm:$0xff] (!%p3034_p9), %vm1691_vm4, %v4369_v16 }
 0x518   : > { %2213 = vrot.lane.b32.xlu1 %v1290_v11, %s3561_s20 }
 0x52b   : > { %v1793_v8 = vpop.xlane.xlu1 %1792 }
 0x52c   : > { %3358 = vrcp.f32 %v1793_v8 }
 0x52d   : > { %3360 = vrcp.f32 %v1796_v7 }
 0x52f   : > { %v1799_v32 = vpop.xlane.xlu1 %1798 }
 0x530   : > { %3362 = vrcp.f32 %v1799_v32 }
 0x536   : > { %v3359_v10 = vpop.eup %3358 }
 0x537   : > { %v4372_v13 = vmul.f32 %v3359_v10, %v4288_v42  ;;  %v3361_v59 = vpop.eup %3360 }
 0x538   : > { %v4377_v18 = vmul.f32 %v3361_v59, %v4279_v50 }
 0x539   : > { %v1868_v9 = vpack.c.bf16 %v4372_v13, %v4369_v16  ;;  %2713 = vst.msk [vmem:[#allocation7 + $0x8] sm:$0xff] (!%p3034_p9), %vm1691_vm4, %v4372_v13 }
 0x53a   : > { %v3363_v11 = vpop.eup %3362  ;;  %2714 = vst.msk [vmem:[#allocation7 + $0x10] sm:$0xff] (!%p3034_p9), %vm1691_vm4, %v4377_v18 }
 0x53b   : > { %v4380_v45 = vmul.f32 %v3363_v11, %v4292_v27  ;;  %3142 = vmatmul.mubr.msk.bf16.vlgmr.msra.gmra.mrb[16].mxu0 %vm1691_vm4, %v1868_v9 }
 0x53c   : > { %3152 = vmatpush3.bf16.msra.mxu0 %v1974_v4  ;;  %3153 = vmatprep.mubr.msk.bf16.mxu0 %vm3559_vm3, %v3558_v35 }
 0x53d   : > { %v1869_v21 = vpack.c.bf16 %v4380_v45, %v4377_v18  ;;  %3163 = vmatprep.subr.bf16.mxu0 %v3558_v35  ;;  %2715 = vst.msk [vmem:[#allocation7 + $0x18] sm:$0xff] (!%p3034_p9), %vm1691_vm4, %v4380_v45 }
 0x53f   : > { %3148 = vmatmul.mubr.msk.bf16.vlgmr.msra.gmra.mrb[24].mxu1 %vm1691_vm4, %v1869_v21 }
 0x540   : > { %3158 = vmatpush3.bf16.msra.mxu1 %v2022_v48  ;;  %3159 = vmatprep.mubr.msk.bf16.mxu1 %vm3559_vm3, %v3558_v35 }
 0x541   : > { %3169 = vmatprep.subr.bf16.mxu1 %v3558_v35 }
 0x545   : > { %v1802_v50 = vpop.xlane.xlu0 %1801 }
 0x546   : > { %3364 = vrcp.f32 %v1802_v50  ;;  %v3308_v50 = vld [vmem:[%s4718_s30] sm:$0xff]  }
 0x547   : > { %v1805_v42 = vpop.xlane.xlu1 %1804 }
 0x548   : > { %3366 = vrcp.f32 %v1805_v42 }
 0x549   : > { %v1808_v27 = vpop.xlane.xlu0 %1807 }
 0x54a   : > { %3368 = vrcp.f32 %v1808_v27 }
 0x54b   : > { %v1811_v38 = vpop.xlane.xlu1 %1810 }
 0x54c   : > { %3370 = vrcp.f32 %v1811_v38 }
 0x54d   : > { %v1814_v51 = vpop.xlane.xlu0 %1813 }
 0x54e   : > { %3372 = vrcp.f32 %v1814_v51 }
 0x54f   : > { %v1817_v23 = vpop.xlane.xlu1 %1816 }
 0x550   : > { %v3365_v53 = vpop.eup %3364  ;;  %3374 = vrcp.f32 %v1817_v23 }
 0x551   : > { %v1820_v31 = vpop.xlane.xlu0 %1819  ;;  %v4393_v22 = vmul.f32 %v3365_v53, %v4303_v5 }
 0x552   : > { %v3367_v57 = vpop.eup %3366  ;;  %3376 = vrcp.f32 %v1820_v31 }
 0x553   : > { %v4396_v24 = vmul.f32 %v3367_v57, %v4308_v29  ;;  %v1823_v62 = vpop.xlane.xlu1 %1822  ;;  %2716 = vst.msk [vmem:[#allocation7 + $0x20] sm:$0xff] (!%p3034_p9), %vm1691_vm4, %v4393_v22 }
 0x554   : > { %v3369_v2 = vpop.eup %3368  ;;  %3378 = vrcp.f32 %v1823_v62 }
 0x555   : > { %v1870_v41 = vpack.c.bf16 %v4396_v24, %v4393_v22  ;;  %v4401_v6 = vmul.f32 %v3369_v2, %v4313_v30  ;;  %2717 = vst.msk [vmem:[#allocation7 + $0x28] sm:$0xff] (!%p3034_p9), %vm1691_vm4, %v4396_v24 }
 0x556   : > { %v3371_v47 = vpop.eup %3370  ;;  %v1826_v33 = vpop.xlane.xlu0 %1825 }
 0x557   : > { %v4404_v28 = vmul.f32 %v3371_v47, %v4318_v44  ;;  %3154 = vmatmul.mubr.msk.bf16.vlgmr.msra.gmra.mrb[20].mxu0 %vm1691_vm4, %v1870_v41  ;;  %3380 = vrcp.f32 %v1826_v33  ;;  %2718 = vst.msk [vmem:[#allocation7 + $0x30] sm:$0xff] (!%p3034_p9), %vm1691_vm4, %v4401_v6 }
 0x558   : > { %v3373_v5 = vpop.eup %3372  ;;  %3164 = vmatpush3.bf16.msra.mxu0 %v2070_v3  ;;  %3165 = vmatprep.mubr.msk.bf16.mxu0 %vm3559_vm3, %v3558_v35 }
 0x559   : > { %v1871_v29 = vpack.c.bf16 %v4404_v28, %v4401_v6  ;;  %3175 = vmatprep.subr.bf16.mxu0 %v3558_v35  ;;  %v4413_v30 = vmul.f32 %v3373_v5, %v4323_v19  ;;  %2719 = vst.msk [vmem:[#allocation7 + $0x38] sm:$0xff] (!%p3034_p9), %vm1691_vm4, %v4404_v28 }
 0x55a   : > { %v3375_v55 = vpop.eup %3374  ;;  %v1832_v12 = vpop.xlane.xlu0 %1831 }
 0x55b   : > { %v4416_v44 = vmul.f32 %v3375_v55, %v4327_v36  ;;  %3160 = vmatmul.mubr.msk.bf16.vlgmr.msra.gmra.mrb[28].mxu1 %vm1691_vm4, %v1871_v29  ;;  %v3309_v29 = vld [vmem:[%s4718_s30 + $0x8] sm:$0xff]   ;;  %2720 = vst.msk [vmem:[#allocation7 + $0x40] sm:$0xff] (!%p3034_p9), %vm1691_vm4, %v4413_v30 }
 0x55c   : > { %v3377_v14 = vpop.eup %3376  ;;  %3170 = vmatpush3.bf16.msra.mxu1 %v4366_v25  ;;  %3171 = vmatprep.mubr.msk.bf16.mxu1 %vm3559_vm3, %v3558_v35 }
 0x55d   : > { %v1872_v20 = vpack.c.bf16 %v4416_v44, %v4413_v30  ;;  %3181 = vmatprep.subr.bf16.mxu1 %v3558_v35  ;;  %v4426_v19 = vmul.f32 %v3377_v14, %v4331_v15  ;;  %2721 = vst.msk [vmem:[#allocation7 + $0x48] sm:$0xff] (!%p3034_p9), %vm1691_vm4, %v4416_v44 }
 0x55e   : > { %v3379_v39 = vpop.eup %3378  ;;  %v2166_v46 = vpop.permute.xlu0 %2165 }
 0x55f   : > { %v4429_v36 = vmul.f32 %v3379_v39, %v4336_v37  ;;  %3166 = vmatmul.mubr.msk.bf16.vlgmr.msra.gmra.mrb[24].mxu0 %vm1691_vm4, %v1872_v20  ;;  %2722 = vst.msk [vmem:[#allocation7 + $0x50] sm:$0xff] (!%p3034_p9), %vm1691_vm4, %v4426_v19 }
 0x560   : > { %3176 = vmatpush3.bf16.msra.mxu0 %v2166_v46  ;;  %3177 = vmatprep.mubr.msk.bf16.mxu0 %vm3559_vm3, %v3558_v35 }
 0x561   : > { %v1873_v60 = vpack.c.bf16 %v4429_v36, %v4426_v19  ;;  %v3381_v48 = vpop.eup %3380  ;;  %3187 = vmatprep.subr.bf16.mxu0 %v3308_v50  ;;  %2723 = vst.msk [vmem:[#allocation7 + $0x58] sm:$0xff] (!%p3034_p9), %vm1691_vm4, %v4429_v36 }
 0x562   : > { %v4440_v52 = vmul.f32 %v3381_v48, %v4340_v26 }
 0x563   : > { %3172 = vmatmul.mubr.msk.bf16.vlgmr.msra.gmra.mrb[32].mxu1 %vm1691_vm4, %v1873_v60 }
 0x564   : > { %3183 = vmatprep.mubr.msk.bf16.mxu1 %vm3559_vm3, %v3558_v35  ;;  %2724 = vst.msk [vmem:[#allocation7 + $0x60] sm:$0xff] (!%p3034_p9), %vm1691_vm4, %v4440_v52 }
 0x590   : > { %v1829_v15 = vpop.xlane.xlu1 %1828 }
 0x591   : > { %3382 = vrcp.f32 %v1829_v15 }
 0x592   : > { %3384 = vrcp.f32 %v1832_v12 }
 0x594   : > { %v1835_v37 = vpop.xlane.xlu1 %1834 }
 0x595   : > { %3386 = vrcp.f32 %v1835_v37 }
 0x598   : > { %v2214_v4 = vpop.permute.xlu1 %2213 }
 0x599   : > { %3182 = vmatpush3.bf16.msra.mxu1 %v2214_v4 }
 0x59b   : > { %v3383_v34 = vpop.eup %3382 }
 0x59c   : > { %v4443_v40 = vmul.f32 %v3383_v34, %v4354_v63  ;;  %v3385_v56 = vpop.eup %3384 }
 0x59d   : > { %v4448_v61 = vmul.f32 %v3385_v56, %v4344_v49 }
 0x59e   : > { %v1874_v35 = vpack.c.bf16 %v4443_v40, %v4440_v52  ;;  %2725 = vst.msk [vmem:[#allocation7 + $0x68] sm:$0xff] (!%p3034_p9), %vm1691_vm4, %v4443_v40 }
 0x59f   : > { %v3387_v58 = vpop.eup %3386  ;;  %2726 = vst.msk [vmem:[#allocation7 + $0x70] sm:$0xff] (!%p3034_p9), %vm1691_vm4, %v4448_v61 }
 0x5a0   : > { %v4451_v0 = vmul.f32 %v3387_v58, %v4358_v54  ;;  %3178 = vmatmul.mubr.msk.bf16.vlgmr.msra.gmra.mrb[28].mxu0 %vm1691_vm4, %v1874_v35 }
 0x5a1   : > { %3188 = vmatpush3.bf16.msra.mxu0 %v3308_v50 }
 0x5a2   : > { %v1875_v26 = vpack.c.bf16 %v4451_v0, %v4448_v61  ;;  %3189 = vmatprep.subr.bf16.mxu0 %v3309_v29  ;;  %2727 = vst.msk [vmem:[#allocation7 + $0x78] sm:$0xff] (!%p3034_p9), %vm1691_vm4, %v4451_v0 }
 0x5a4   : > { %3184 = vmatmul.mubr.msk.bf16.vlgmr.msra.gmra.mrb[36].mxu1 %vm1691_vm4, %v1875_v26 }
 0x5a5   : > { %3190 = vmatpush3.bf16.msra.mxu0 %v3309_v29 }
 0x60e   : > { %v1917_v63 = vpop.f32.mrb[16].mxu0 }
 0x60f   : > { %v3143_v1 = vpop.f32.mrb[17].mxu0 }
 0x610   : > { %v1920_v3 = vpop.f32.mrb[18].mxu0 }
 0x611   : > { %v2260_v25 = vpack.c.bf16 %v1920_v3, %v1917_v63  ;;  %v3144_v43 = vpop.f32.mrb[19].mxu0 }
 0x612   : > { %v1965_v7 = vpop.f32.mrb[24].mxu1 }
 0x613   : > { %v3149_v8 = vpop.f32.mrb[25].mxu1 }
 0x614   : > { %v1968_v49 = vpop.f32.mrb[26].mxu1 }
 0x615   : > { %v2261_v32 = vpack.c.bf16 %v1968_v49, %v1965_v7  ;;  %v3150_v17 = vpop.f32.mrb[27].mxu1 }
 0x62a   : > { %v2013_v54 = vpop.f32.mrb[20].mxu0 }
 0x62b   : > { %v3155_v10 = vpop.f32.mrb[21].mxu0 }
 0x62c   : > { %v2016_v59 = vpop.f32.mrb[22].mxu0 }
 0x62d   : > { %v2262_v9 = vpack.c.bf16 %v2016_v59, %v2013_v54  ;;  %v3156_v11 = vpop.f32.mrb[23].mxu0 }
 0x62e   : > { %v2061_v21 = vpop.f32.mrb[28].mxu1 }
 0x62f   : > { %2270 = vrot.lane.b32.xlu0 %v2262_v9, %s3554_s27  ;;  %v3161_v42 = vpop.f32.mrb[29].mxu1  ;;  %v3404_v9 = vld [vmem:[#allocation2 + $0x10] sm:$0xff] }
 0x630   : > { %v2064_v27 = vpop.f32.mrb[30].mxu1  ;;  %v3405_v42 = vld [vmem:[#allocation2] sm:$0xff] }
 0x631   : > { %v2263_v38 = vpack.c.bf16 %v2064_v27, %v2061_v21  ;;  %v3162_v51 = vpop.f32.mrb[31].mxu1 }
 0x632   : > { %v2109_v23 = vpop.f32.mrb[24].mxu0  ;;  %v3406_v51 = vld [vmem:[#allocation2 + $0x8] sm:$0xff] }
 0x633   : > { %2272 = vrot.lane.b32.xlu1 %v2263_v38, %s3554_s27  ;;  %v3167_v53 = vpop.f32.mrb[25].mxu0 }
 0x634   : > { %v2112_v31 = vpop.f32.mrb[26].mxu0  ;;  %v3407_v53 = vld [vmem:[#allocation2 + $0x18] sm:$0xff] }
 0x635   : > { %v2264_v57 = vpack.c.bf16 %v2112_v31, %v2109_v23  ;;  %v3168_v62 = vpop.f32.mrb[27].mxu0 }
 0x636   : > { %v2157_v2 = vpop.f32.mrb[32].mxu1 }
 0x637   : > { %2276 = vrot.lane.b32.xlu0 %v2264_v57, %s3562_s19  ;;  %v3173_v41 = vpop.f32.mrb[33].mxu1 }
 0x638   : > { %v2160_v47 = vpop.f32.mrb[34].mxu1 }
 0x639   : > { %v2265_v33 = vpack.c.bf16 %v2160_v47, %v2157_v2  ;;  %v3174_v5 = vpop.f32.mrb[35].mxu1 }
 0x63b   : > { %2278 = vrot.lane.b32.xlu1 %v2265_v33, %s3562_s19 }
 0x673   : > { %v2205_v55 = vpop.f32.mrb[28].mxu0 }
 0x674   : > { %v3179_v12 = vpop.f32.mrb[29].mxu0 }
 0x675   : > { %v2208_v14 = vpop.f32.mrb[30].mxu0 }
 0x676   : > { %v2266_v20 = vpack.c.bf16 %v2208_v14, %v2205_v55  ;;  %v3180_v39 = vpop.f32.mrb[31].mxu0 }
 0x677   : > { %v2253_v46 = vpop.f32.mrb[36].mxu1  ;;  %v3311_v39 = vld [vmem:[%s3788_s3 + $0x8] sm:$0xff]  }
 0x678   : > { %v3185_v60 = vpop.f32.mrb[37].mxu1  ;;  %2282 = vrot.lane.b32.xlu0 %v2266_v20, %s3557_s26  ;;  %v3310_v20 = vld [vmem:[%s3788_s3] sm:$0xff]  }
 0x679   : > { %v2256_v15 = vpop.f32.mrb[38].mxu1  ;;  %3195 = vmatprep.subr.bf16.mxu1 %v3310_v20 }
 0x67a   : > { %v2267_v37 = vpack.c.bf16 %v2256_v15, %v2253_v46  ;;  %v3186_v4 = vpop.f32.mrb[39].mxu1  ;;  %3196 = vmatpush3.bf16.msra.mxu1 %v3310_v20 }
 0x67b   : > { %3197 = vmatprep.subr.bf16.mxu1 %v3311_v39 }
 0x67c   : > { %2284 = vrot.lane.b32.xlu1 %v2267_v37, %s3557_s26 }
 0x67e   : > { %3198 = vmatpush3.bf16.msra.mxu1 %v3311_v39 }
 0x6a1   : > { %v2271_v48 = vpop.permute.xlu0 %2270 }
 0x6a2   : > { %v2288_v35 = vsel %vm982_vm2, %v2260_v25, %v2271_v48  ;;  %v3015_v25 = vld [vmem:[%s723_s22] ss:$0 sm:$0xff] }
 0x6a5   : > { %v2273_v34 = vpop.permute.xlu1 %2272 }
 0x6a6   : > { %v2291_v3 = vsel %vm982_vm2, %v2261_v32, %v2273_v34 }
 0x6a9   : > { %v2277_v56 = vpop.permute.xlu0 %2276 }
 0x6aa   : > { %v2293_v58 = vsel %vm1691_vm4, %v2288_v35, %v2277_v56 }
 0x6ad   : > { %v2279_v26 = vpop.permute.xlu1 %2278 }
 0x6ae   : > { %v2295_v43 = vsel %vm1691_vm4, %v2291_v3, %v2279_v26 }
 0x6ea   : > { %v2283_v63 = vpop.permute.xlu0 %2282 }
 0x6eb   : > { %v2298_v1 = vsel %vm2296_vm5, %v2293_v58, %v2283_v63 }
 0x6ec   : > { %3191 = vmatprep.mubr.msk.bf16.mxu0 %vm765_vm1, %v2298_v1 }
 0x6ee   : > { %v2285_v7 = vpop.permute.xlu1 %2284 }
 0x6ef   : > { %v2300_v8 = vsel %vm2296_vm5, %v2295_v43, %v2285_v7 }
 0x6f0   : > { %3192 = vmatmul.mubr.msk.bf16.vlgmr.msra.gmra.mrb[32].mxu0 %vm765_vm1, %v2300_v8 }
 0x7c3   : > { %v3193_v49 = vpop.f32.mrb[32].mxu0 }
 0x7c4   : > { %v2371_v17 = vadd.f32 %v3193_v49, %v3015_v25  ;;  %v2362_v54 = vpop.f32.mrb[33].mxu0 }
 0x7c5   : > { %v2363_v10 = vadd.f32 %v3015_v25, %v2362_v54  ;;  %v3194_v59 = vpop.f32.mrb[34].mxu0 }
 0x7c6   : > { %v4474_v11 = vadd.f32 %v3404_v9, %v2371_v17  ;;  %v2365_v32 = vpop.f32.mrb[35].mxu0  ;;  %v2374_v21 = vadd.f32 %v3194_v59, %v3015_v25 }
 0x7c7   : > { %v2366_v50 = vadd.f32 %v3015_v25, %v2365_v32  ;;  %v4476_v27 = vadd.f32 %v3405_v42, %v2363_v10 }
 0x7c8   : > { %v2387_v38 = vsel %vm765_vm1, %v4474_v11, 0.0  ;;  %v4482_v31 = vadd.f32 %v3407_v53, %v2374_v21  ;;  %v2399_v12 = vmul.f32 %v4474_v11, %v4474_v11 }
 0x7c9   : > { %v4480_v23 = vadd.f32 %v3406_v51, %v2366_v50  ;;  %2388 = vadd.xlane.f32.xlu0 %v2387_v38  ;;  %v2381_v2 = vsel %vm765_vm1, %v4476_v27, 0.0  ;;  %v2397_v5 = vmul.f32 %v4476_v27, %v4476_v27 }
 0x7ca   : > { %v2400_v47 = vmul.f32 %v4482_v31, %v4482_v31  ;;  %v2390_v33 = vsel %vm765_vm1, %v4482_v31, 0.0  ;;  %v2407_v14 = vsel %vm765_vm1, %v2399_v12, 0.0 }
 0x7cb   : > { %v2384_v57 = vsel %vm765_vm1, %v4480_v23, 0.0  ;;  %v2398_v62 = vmul.f32 %v4480_v23, %v4480_v23  ;;  %v2401_v55 = vsel %vm765_vm1, %v2397_v5, 0.0 }
 0x7cc   : > { %2385 = vadd.xlane.f32.xlu1 %v2384_v57  ;;  %v2410_v29 = vsel %vm765_vm1, %v2400_v47, 0.0  ;;  %v3020_v57 = vld [vmem:[%s4719_s25] ss:$0 sm:$0xff] }
 0x7cd   : > { %2382 = vadd.xlane.f32.xlu0 %v2381_v2  ;;  %v2404_v41 = vsel %vm765_vm1, %v2398_v62, 0.0 }
 0x7d0   : > { %2405 = vadd.xlane.f32.xlu1 %v2404_v41 }
 0x7d1   : > { %2391 = vadd.xlane.f32.xlu0 %v2390_v33 }
 0x7d4   : > { %2411 = vadd.xlane.f32.xlu1 %v2410_v29 }
 0x7d5   : > { %2402 = vadd.xlane.f32.xlu0 %v2401_v55  ;;  %v3021_v55 = vld [vmem:[%s729_s29] ss:$0 sm:$0xff] }
 0x7d9   : > { %2408 = vadd.xlane.f32.xlu0 %v2407_v14 }
 0x856   : > { %v2389_v46 = vpop.xlane.xlu0 %2388 }
 0x857   : > { %v2395_v8 = vmul.f32 0.03125, %v2389_v46 }
 0x859   : > { %v2386_v60 = vpop.xlane.xlu1 %2385  ;;  %v2423_v9 = vmul.f32 %v2395_v8, %v2395_v8  ;;  %v2419_v12 = vsub.f32 %v4474_v11, %v2395_v8 }
 0x85a   : > { %v2394_v15 = vmul.f32 0.03125, %v2386_v60  ;;  %v2383_v37 = vpop.xlane.xlu0 %2382 }
 0x85b   : > { %v2393_v35 = vmul.f32 0.03125, %v2383_v37 }
 0x85c   : > { %v2422_v48 = vmul.f32 %v2394_v15, %v2394_v15  ;;  %v2418_v51 = vsub.f32 %v4480_v23, %v2394_v15 }
 0x85d   : > { %v2406_v4 = vpop.xlane.xlu1 %2405  ;;  %v2421_v25 = vmul.f32 %v2393_v35, %v2393_v35  ;;  %v2417_v2 = vsub.f32 %v4476_v27, %v2393_v35  ;;  %v3312_v35 = vld [vmem:[%s3797_s28] sm:$0xff]  }
 0x85e   : > { %v2414_v34 = vmul.f32 0.03125, %v2406_v4  ;;  %v2392_v56 = vpop.xlane.xlu0 %2391  ;;  %3203 = vmatprep.subr.bf16.mxu0 %v3312_v35 }
 0x85f   : > { %v2396_v58 = vmul.f32 0.03125, %v2392_v56  ;;  %3204 = vmatpush3.bf16.msra.mxu0 %v3312_v35 }
 0x860   : > { %v2426_v26 = vsub.f32 %v2414_v34, %v2422_v48 }
 0x861   : > { %v2424_v63 = vmul.f32 %v2396_v58, %v2396_v58  ;;  %v2412_v1 = vpop.xlane.xlu1 %2411  ;;  %v2420_v41 = vsub.f32 %v4482_v31, %v2396_v58  ;;  %v3022_v58 = vld [vmem:[%s737_s6] ss:$0 sm:$0xff]  ;;  %s3563_s6 = smov 64  }
 0x862   : > { %v2430_v3 = vadd.f32 1e-05, %v2426_v26  ;;  %v2416_v43 = vmul.f32 0.03125, %v2412_v1  ;;  %v2403_v7 = vpop.xlane.xlu0 %2402 }
 0x863   : > { %v2413_v49 = vmul.f32 0.03125, %v2403_v7 }
 0x864   : > { %3388 = vrsqrt.f32 %v2430_v3  ;;  %v2428_v17 = vsub.f32 %v2416_v43, %v2424_v63 }
 0x865   : > { %v2425_v54 = vsub.f32 %v2413_v49, %v2421_v25 }
 0x866   : > { %v2432_v10 = vadd.f32 1e-05, %v2428_v17  ;;  %v2409_v59 = vpop.xlane.xlu0 %2408 }
 0x867   : > { %v2429_v32 = vadd.f32 1e-05, %v2425_v54  ;;  %v2415_v21 = vmul.f32 0.03125, %v2409_v59 }
 0x868   : > { %3390 = vrsqrt.f32 %v2432_v10 }
 0x869   : > { %3392 = vrsqrt.f32 %v2429_v32  ;;  %v2427_v50 = vsub.f32 %v2415_v21, %v2423_v9 }
 0x86b   : > { %v2431_v42 = vadd.f32 1e-05, %v2427_v50 }
 0x86d   : > { %3394 = vrsqrt.f32 %v2431_v42 }
 0x86e   : > { %v3389_v38 = vpop.eup %3388 }
 0x86f   : > { %v2438_v53 = vmul.f32 %v3389_v38, %v2418_v51 }
 0x871   : > { %v2449_v29 = vmul.f32 %v3020_v57, %v2438_v53 }
 0x872   : > { %v3391_v62 = vpop.eup %3390 }
 0x873   : > { %v3393_v47 = vpop.eup %3392  ;;  %v2440_v33 = vmul.f32 %v3391_v62, %v2420_v41  ;;  %v2460_v60 = vadd.f32 %v3021_v55, %v2449_v29  ;;  %v3313_v29 = vld [vmem:[%s3797_s28 + $0x8] sm:$0xff]  }
 0x874   : > { %v2437_v5 = vmul.f32 %v3393_v47, %v2417_v2  ;;  %3205 = vmatprep.subr.bf16.mxu0 %v3313_v29 }
 0x875   : > { %v2451_v15 = vmul.f32 %v3020_v57, %v2440_v33  ;;  %3206 = vmatpush3.bf16.msra.mxu0 %v3313_v29 }
 0x876   : > { %v2448_v14 = vmul.f32 %v3020_v57, %v2437_v5 }
 0x877   : > { %v3395_v20 = vpop.eup %3394  ;;  %v2462_v34 = vadd.f32 %v3021_v55, %v2451_v15 }
 0x878   : > { %v2439_v39 = vmul.f32 %v3395_v20, %v2419_v12  ;;  %v2459_v46 = vadd.f32 %v3021_v55, %v2448_v14 }
 0x87a   : > { %v2463_v37 = vpack.c.bf16 %v2460_v60, %v2459_v46  ;;  %v2450_v4 = vmul.f32 %v3020_v57, %v2439_v39  ;;  %v3315_v39 = vld [vmem:[%s3797_s28 + $0x18] sm:$0xff]  }
 0x87c   : > { %3199 = vmatprep.mubr.msk.bf16.mxu1 %vm765_vm1, %v2463_v37  ;;  %v2461_v48 = vadd.f32 %v3021_v55, %v2450_v4  ;;  %v3314_v55 = vld [vmem:[%s3797_s28 + $0x10] sm:$0xff]  }
 0x87d   : > { %3207 = vmatprep.subr.bf16.mxu0 %v3314_v55 }
 0x87e   : > { %v2464_v56 = vpack.c.bf16 %v2462_v34, %v2461_v48  ;;  %3208 = vmatpush3.bf16.msra.mxu0 %v3314_v55 }
 0x87f   : > { %3209 = vmatprep.subr.bf16.mxu0 %v3315_v39 }
 0x880   : > { %3200 = vmatmul.mubr.msk.bf16.vlgmr.msra.gmra.mrb[40].mxu1 %vm765_vm1, %v2464_v56 }
 0x882   : > { %3210 = vmatpush3.bf16.msra.mxu0 %v3315_v39 }
 0x953   : > { %v3201_v26 = vpop.f32.mrb[40].mxu1 }
 0x954   : > { %v4526_v63 = vadd.f32 %v3201_v26, %v3022_v58  ;;  %v2528_v1 = vpop.f32.mrb[41].mxu1 }
 0x955   : > { %v2529_v3 = vadd.f32 %v3022_v58, %v2528_v1  ;;  %v3202_v43 = vpop.f32.mrb[42].mxu1 }
 0x956   : > { %v2545_v7 = vmul.f32 %v4526_v63, %v4526_v63  ;;  %v4530_v8 = vadd.f32 %v3202_v43, %v3022_v58  ;;  %v2531_v25 = vpop.f32.mrb[43].mxu1 }
 0x957   : > { %v2543_v49 = vmul.f32 %v2529_v3, %v2529_v3  ;;  %v2532_v17 = vadd.f32 %v3022_v58, %v2531_v25 }
 0x958   : > { %v2549_v54 = vmul.f32 %v2545_v7, %v4526_v63  ;;  %v2546_v10 = vmul.f32 %v4530_v8, %v4530_v8 }
 0x959   : > { %v2547_v59 = vmul.f32 %v2543_v49, %v2529_v3  ;;  %v2544_v9 = vmul.f32 %v2532_v17, %v2532_v17 }
 0x95a   : > { %v2553_v32 = vmul.f32 0.044715, %v2549_v54  ;;  %v2550_v21 = vmul.f32 %v2546_v10, %v4530_v8 }
 0x95b   : > { %v2551_v50 = vmul.f32 0.044715, %v2547_v59  ;;  %v2548_v42 = vmul.f32 %v2544_v9, %v2532_v17 }
 0x95c   : > { %v2557_v38 = vadd.f32 %v2553_v32, %v4526_v63  ;;  %v2554_v51 = vmul.f32 0.044715, %v2550_v21 }
 0x95d   : > { %v2555_v53 = vadd.f32 %v2551_v50, %v2529_v3  ;;  %v2552_v57 = vmul.f32 0.044715, %v2548_v42  ;;  %v3027_v42 = vld [vmem:[%s745_s14] ss:$0 sm:$0xff] }
 0x95e   : > { %v2558_v62 = vadd.f32 %v2554_v51, %v4530_v8  ;;  %v2561_v2 = vmul.f32 0.7978846, %v2557_v38 }
 0x95f   : > { %v2556_v41 = vadd.f32 %v2552_v57, %v2532_v17  ;;  %v2559_v47 = vmul.f32 0.7978846, %v2555_v53 }
 0x960   : > { %3396 = vtanh.f32 %v2561_v2  ;;  %v2562_v33 = vmul.f32 0.7978846, %v2558_v62 }
 0x961   : > { %3398 = vtanh.f32 %v2559_v47  ;;  %v2560_v5 = vmul.f32 0.7978846, %v2556_v41 }
 0x962   : > { %3400 = vtanh.f32 %v2562_v33 }
 0x963   : > { %3402 = vtanh.f32 %v2560_v5 }
 0x96a   : > { %v3397_v12 = vpop.eup %3396 }
 0x96b   : > { %v3399_v14 = vpop.eup %3398  ;;  %v2569_v20 = vadd.f32 1.0, %v3397_v12 }
 0x96c   : > { %v3401_v46 = vpop.eup %3400  ;;  %v2567_v60 = vadd.f32 1.0, %v3399_v14 }
 0x96d   : > { %v3403_v15 = vpop.eup %3402  ;;  %v2573_v37 = vmul.f32 0.5, %v2569_v20  ;;  %v2570_v56 = vadd.f32 1.0, %v3401_v46 }
 0x96e   : > { %v2571_v4 = vmul.f32 0.5, %v2567_v60  ;;  %v2568_v48 = vadd.f32 1.0, %v3403_v15 }
 0x96f   : > { %v2577_v34 = vmul.f32 %v2573_v37, %v4526_v63  ;;  %v2574_v1 = vmul.f32 0.5, %v2570_v56 }
 0x970   : > { %v2575_v35 = vmul.f32 %v2571_v4, %v2529_v3  ;;  %v2572_v58 = vmul.f32 0.5, %v2568_v48 }
 0x971   : > { %2587 = vrot.lane.b32.xlu1 %v2577_v34, %s3563_s6  ;;  %v2578_v43 = vmul.f32 %v2574_v1, %v4530_v8 }
 0x972   : > { %2583 = vrot.lane.b32.xlu0 %v2575_v35, %s3563_s6  ;;  %v2576_v26 = vmul.f32 %v2572_v58, %v2532_v17 }
 0x975   : > { %2585 = vrot.lane.b32.xlu1 %v2576_v26, %s3563_s6 }
 0x979   : > { %2589 = vrot.lane.b32.xlu1 %v2578_v43, %s3563_s6 }
 0x9e3   : > { %v2588_v7 = vpop.permute.xlu1 %2587 }
 0x9e4   : > { %v2584_v25 = vpop.permute.xlu0 %2583  ;;  %v2597_v32 = vmul.f32 %v2588_v7, %v4526_v63 }
 0x9e5   : > { %v2595_v54 = vmul.f32 %v2584_v25, %v2529_v3 }
 0x9e7   : > { %v2586_v49 = vpop.permute.xlu1 %2585 }
 0x9e8   : > { %v2596_v10 = vmul.f32 %v2586_v49, %v2532_v17 }
 0x9ea   : > { %v2599_v59 = vpack.c.bf16 %v2596_v10, %v2595_v54 }
 0x9eb   : > { %v2590_v9 = vpop.permute.xlu1 %2589 }
 0x9ec   : > { %v2598_v21 = vmul.f32 %v2590_v9, %v4530_v8  ;;  %3211 = vmatprep.mubr.msk.bf16.mxu0 %vm2640_vm6, %v2599_v59 }
 0x9ee   : > { %v2600_v50 = vpack.c.bf16 %v2598_v21, %v2597_v32 }
 0x9f0   : > { %3212 = vmatmul.mubr.msk.bf16.vlgmr.msra.gmra.mrb[36].mxu0 %vm2640_vm6, %v2600_v50 }
 0xac3   : > { %v3213_v38 = vpop.f32.mrb[36].mxu0 }
 0xac4   : > { %v2690_v51 = vadd.f32 %v3213_v38, %v3027_v42  ;;  %v2681_v53 = vpop.f32.mrb[37].mxu0 }
 0xac5   : > { %v2682_v3 = vadd.f32 %v3027_v42, %v2681_v53  ;;  %v3214_v17 = vpop.f32.mrb[38].mxu0  ;;  %2707 = sbr.rel (%p3034_p9) target bundleno = 2764 (0xacc), region = 88 }
 0xac6   : > { %v2698_v57 = vadd.f32 %v2690_v51, %v4474_v11  ;;  %v2693_v62 = vadd.f32 %v3214_v17, %v3027_v42  ;;  %v2684_v2 = vpop.f32.mrb[39].mxu0 }
 0xac7   : > { %v2696_v63 = vadd.f32 %v2682_v3, %v4476_v27  ;;  %v2685_v8 = vadd.f32 %v3027_v42, %v2684_v2 }
 0xac8   : > { %2702 = vst.msk [vmem:[#allocation2 + $0x10] sm:$0xff] %vm765_vm1, %v2698_v57  ;;  %v2699_v41 = vadd.f32 %v2693_v62, %v4482_v31  ;;  %2710 = vst.msk [vmem:[#allocation6 + $0x10] sm:$0xff] (!%p3034_p9), %vm765_vm1, %v2698_v57 }
 0xac9   : > { %2700 = vst.msk [vmem:[#allocation2] sm:$0xff] %vm765_vm1, %v2696_v63  ;;  %v2697_v47 = vadd.f32 %v2685_v8, %v4480_v23  ;;  %2708 = vst.msk [vmem:[#allocation6] sm:$0xff] (!%p3034_p9), %vm765_vm1, %v2696_v63 }
 0xaca   : > { %2703 = vst.msk [vmem:[#allocation2 + $0x18] sm:$0xff] %vm765_vm1, %v2699_v41  ;;  %2711 = vst.msk [vmem:[#allocation6 + $0x18] sm:$0xff] (!%p3034_p9), %vm765_vm1, %v2699_v41 }
 0xacb   : > { %2701 = vst.msk [vmem:[#allocation2 + $0x8] sm:$0xff] %vm765_vm1, %v2697_v47  ;;  %2709 = vst.msk [vmem:[#allocation6 + $0x8] sm:$0xff] (!%p3034_p9), %vm765_vm1, %v2697_v47 }
 0xacc PF: > { %s4720_s21 = sld [smem:[#allocation15_spill]]  ;;  %s3564_s18 = smov [#allocation6]  }
 0xacd   : > { %s2737_s2 = sshll.u32 %s3564_s18, 4  ;;  %s3565_s20 = smov [#allocation7]   ;;  %s2738_s2 = int_to_ptr.vmem [resolvable:$true] %s2737_s2 }
 0xace   : > { %s2753_s30 = sshll.u32 %s3565_s20, 4  ;;  %s3438_s19 = scalar_lea.vmem %s2738_s2, 512  ;;  %s2754_s30 = int_to_ptr.vmem [resolvable:$true] %s2753_s30 }
 0xacf   : > { %p3439_p6 = scmp.ne.s32.totalorder %s2738_s2, %s3438_s19  ;;  %p3445_p0 = scmp.lt.s32.totalorder %s2738_s2, %s2738_s2 }
 0xad0   : > { %p3446_p2 = scmp.lt.s32.totalorder %s3438_s19, %s3438_s19 }
 0xad2   : > { %s4721_s24 = sadd.s32 4294967295, %s4720_s21   ;;  %p3447_p3 = por %p3446_p2, %p3445_p0 }
 0xad3   : > { %p4597_p11 = scmp.eq.s32.totalorder %s4721_s24, 1 }
 0xad5   : > { %p3440_p8 = pnand %p3439_p6, %p4597_p11 }
 0xad7   : > { %p3441_p12 = pneg %p3440_p8 }
 0xad9   : > { %p3448_p4 = pnand %p3447_p3, %p3441_p12 }
 0xadb   : > { %3451 = shalt.err (!%p3448_p4)
}
 0xadc   : > { %s4723_s3 = sld [smem:[#allocation24_spill]] }
 0xae2   : > { %s3452_s22 = scalar_lea.hbm %s4723_s3, 512 }
 0xae3   : > { %p3453_p1 = scmp.ne.s32.totalorder %s4723_s3, %s3452_s22  ;;  %p3458_p10 = scmp.lt.u32.totalorder %s3452_s22, %s4723_s3 }
 0xae5   : > { %p3454_p5 = pnand %p3453_p1, %p4597_p11 }
 0xae7   : > { %p3455_p13 = pneg %p3454_p5 }
 0xae9   : > { %p3460_p7 = pnand %p3458_p10, %p3455_p13 }
 0xaeb   : > { %3463 = shalt.err (!%p3460_p7)
}
 0xaec   : > { %s3566_s16 = smov 128   ;;  %s3464_s15 = scalar_lea.vmem %s2754_s30, 2048 }
 0xaed   : > { %3222 = dma.vmem_to_hbm [thread:$0]  (%p4597_p11), %s2738_s2, 512, %s4723_s3, [#allocation5], %s3566_s16, %s3566_s16, %s3554_s27  }
 0xaee   : > { %p3465_p9 = scmp.ne.s32.totalorder %s2754_s30, %s3464_s15  ;;  %p3471_p12 = scmp.lt.s32.totalorder %s2754_s30, %s2754_s30 }
 0xaef   : > { %p3472_p0 = scmp.lt.s32.totalorder %s3464_s15, %s3464_s15 }
 0xaf0   : > { %p3466_p6 = pnand %p3465_p9, %p4597_p11 }
 0xaf1   : > { %p3473_p2 = por %p3472_p0, %p3471_p12 }
 0xaf2   : > { %p3467_p8 = pneg %p3466_p6 }
 0xaf4   : > { %p3474_p3 = pnand %p3473_p2, %p3467_p8 }
 0xaf6   : > { %3477 = shalt.err (!%p3474_p3)
}
 0xaf7   : > { %s4724_s18 = sld [smem:[#allocation25_spill]] }
 0xafd   : > { %s4725_s5 = smov %s4724_s18  ;;  %s3478_s20 = scalar_lea.hbm %s4724_s18, 2048 }
 0xafe   : > { %p3479_p4 = scmp.ne.s32.totalorder %s4725_s5, %s3478_s20  ;;  %p3484_p13 = scmp.lt.u32.totalorder %s3478_s20, %s4725_s5 }
 0xb00   : > { %p3480_p1 = pnand %p3479_p4, %p4597_p11 }
 0xb02   : > { %p3481_p5 = pneg %p3480_p1 }
 0xb04   : > { %p3486_p10 = pnand %p3484_p13, %p3481_p5 }
 0xb06   : > { %3489 = shalt.err (!%p3486_p10)
}
 0xb07   : > { %3224 = dma.vmem_to_hbm [thread:$0]  (%p4597_p11), %s2754_s30, 2048, %s4725_s5, [#allocation8], %s3566_s16, %s3566_s16, %s3554_s27  }
 0xb08   : > { %3519 = dma.done.wait (%p4597_p11), [#allocation5], 512  }
 0xb09   : > { %3521 = vsyncadd (%p4597_p11), [#allocation5], 4294966784 }
 0xb0a   : > { %3523 = dma.done.wait (%p4597_p11), [#allocation8], 2048  }
 0xb0b   : > { %3525 = vsyncadd (%p4597_p11), [#allocation8], 4294965248 }
 0xb0c PF: > { %s4726_s4 = sld [smem:[#allocation15_spill]]  ;;  %s4727_s18 = sld [smem:[#allocation12_spill]] }
 0xb0d   : > { %s4728_s19 = sld [smem:[#allocation13_spill]]  ;;  %s4729_s20 = sld [smem:[#allocation17_spill]] }
 0xb0e   : > { %s4730_s21 = sld [smem:[#allocation14_spill]]  ;;  %s4731_s22 = sld [smem:[#allocation16_spill]] }
 0xb12   : > { %s31_s23 = sadd.s32 1, %s4726_s4  }
 0xb13   : > { %p28_p7 = scmp.ge.s32.totalorder %s31_s23, 4  }
 0xb15   :  { %30 = sbr.rel (!%p28_p7) target bundleno = 14 (0xe), region = 170 }
 0xb1c   :  { %2773 = vsyncpa [#allocation4], 1 }
 0xb1d   :  { %2775 = vsyncpa [#allocation4 + $0x1], 1 }
 0xb1e   :  { %2776 = vsyncpa [#allocation5], 1 }
 0xb1f   :  { %2778 = vsyncpa [#allocation5 + $0x1], 1 }
 0xb20   :  { %2779 = vsyncpa [#allocation8], 1 }

</bundles_post_ra>
